<compile_context>
chip_gen: v7x
topology: tpu7x:2x2x1
jax: 0.10.0
libtpu: 0.0.40
codegen_flags: <defaults>
</compile_context>

<pallas_src>
import functools

import jax
import jax.numpy as jnp
from jax.experimental import pallas as pl
from jax.experimental.pallas import tpu as pltpu


def _pick_tile(n, targets=(512, 256, 128)):
    """Largest tile <= 512 that divides n (full extent for small / ragged n)."""
    if n <= targets[0]:
        return n
    for t in targets:
        if n % t == 0:
            return t
    # TODO(synk): pad ragged N to a multiple of 128 instead of falling back to
    #             a full-extent (un-tiled) block.
    return n


def _vmem_limit_bytes():
    """~75% of physical VMEM, capped at 96 MiB.

    -> ~96 MiB on v5e/v6e (128 MiB physical), ~48 MiB on v7x (64 MiB physical).
    Falls back to 48 MiB if the hardware query is unavailable.
    """
    try:
        cap = pltpu.get_tpu_info().vmem_capacity_bytes
    except Exception:
        cap = 64 << 20
    return int(min(96 << 20, (cap * 3) // 4))


def _gat_project_kernel(x_ref, w_ref, ws_ref, asrc_ref, atgt_ref,
                        proj_ref, skip_ref, ssrc_ref, stgt_ref):
    """Row tile of the fused projection.

    Four MXU dots against one resident X tile; each logical segment is written to
    its own lane-dense output ref, so downstream code never slices a packed matmul
    result at non-128-lane offsets.
    """
    x = x_ref[...].astype(jnp.float32)                                     # (TR, F_in)
    # neighbor values for the aggregation matmul -> stored in bf16 (halves HBM bytes)
    proj_ref[...] = jnp.dot(x, w_ref[...],
                            preferred_element_type=jnp.float32).astype(proj_ref.dtype)
    skip_ref[...] = jnp.dot(x, ws_ref[...], preferred_element_type=jnp.float32)
    # Scoring vectors folded into the projection: X @ (W_h a_h) == (X W_h) a_h.
    # Kept in f32: these feed exp() in the softmax, bf16 would hurt accuracy.
    ssrc_ref[...] = jnp.dot(x, asrc_ref[...], preferred_element_type=jnp.float32)
    stgt_ref[...] = jnp.dot(x, atgt_ref[...], preferred_element_type=jnp.float32)


def _gat_attention_kernel(ssrc_ref, stgtT_ref, adj_ref, projk_ref, skip_ref, bias_ref,
                          out_ref, m_scr, l_scr, acc_scr, *, nh, f_out):
    """One (query-tile, neighbor-tile) grid step.

    Per-head LeakyReLU scores, numerator-masked ONLINE softmax (no -1e9 additive
    mask, no full (N, N) scores), bf16 MXU aggregation into a head-concat f32
    accumulator slab; skip + bias + ELU epilogue on the last neighbor tile.
    """
    ki = pl.program_id(1)
    nk = pl.num_programs(1)

    @pl.when(ki == 0)
    def _():
        m_scr[...] = jnp.full_like(m_scr, -jnp.inf)
        l_scr[...] = jnp.zeros_like(l_scr)
        acc_scr[...] = jnp.zeros_like(acc_scr)

    adj = adj_ref[...].astype(jnp.float32)        # (TQ, TN) in {0, 1}
    projk = projk_ref[...]                        # (TN, NH*F_out) bf16 neighbor values
    ssrc = ssrc_ref[...]                          # (TQ, NH) f32
    stgtT = stgtT_ref[...]                        # (NH, TN) f32 (transposed once, outside)

    for h in range(nh):                           # NH is small and static
        lo = h * f_out
        # scores[i, j] = leakyrelu(s_src[i] + s_tgt[j])           (TQ, TN)
        scores = ssrc[:, h:h + 1] + stgtT[h:h + 1, :]
        scores = jnp.where(scores > 0, scores, 0.2 * scores)      # LeakyReLU(0.2)

        # online-softmax update; non-edges simply contribute 0 to the numerator,
        # so no (TQ, TN) additive-mask temporary is needed.
        m_prev = m_scr[:, h:h + 1]
        m_new = jnp.maximum(m_prev, jnp.max(scores, axis=-1, keepdims=True))
        alpha = jnp.exp(m_prev - m_new)                            # (TQ, 1)
        p = jnp.exp(scores - m_new) * adj                          # (TQ, TN)
        l_scr[:, h:h + 1] = alpha * l_scr[:, h:h + 1] + jnp.sum(p, axis=-1, keepdims=True)
        # bf16 operands for the aggregation matmul, f32 accumulation, written
        # straight into the head-concat accumulator slab (no concat at the end).
        acc_scr[:, lo:lo + f_out] = alpha * acc_scr[:, lo:lo + f_out] + jnp.dot(
            p.astype(jnp.bfloat16), projk[:, lo:lo + f_out],
            preferred_element_type=jnp.float32)
        # TODO(synk): a head-batched dot_general / block-diagonal RHS would widen the
        #             MXU result columns beyond F_out per pass at large N (v6e/v7x).
        m_scr[:, h:h + 1] = m_new

    @pl.when(ki == nk - 1)
    def _():
        # Normalize per head in place (assumes >=1 edge per node, e.g. self loops,
        # so the denominator is strictly positive).  approx reciprocal: eval-mode
        # accuracy only (~1e-3 rel. error).
        for h in range(nh):
            lo = h * f_out
            inv = pl.reciprocal(l_scr[:, h:h + 1], approx=True)
            acc_scr[:, lo:lo + f_out] = acc_scr[:, lo:lo + f_out] * inv
        out = acc_scr[...] + skip_ref[...] + bias_ref[...]         # skip + bias
        # ELU (alpha=1); exp argument clamped at 0 so the discarded branch can't overflow
        out = jnp.where(out > 0, out, jnp.exp(jnp.minimum(out, 0.0)) - 1.0)
        out_ref[...] = out.astype(out_ref.dtype)


def gat_layer_imp1(x, mask, proj_param, a_src, a_tgt, skip_w, bias):
    """x: (N, F_in) float32, mask: (N, N) float32 (0 edge / -1e9 non-edge).

    proj_param : (NH, F_in, F_out)
    a_src/a_tgt: (NH, F_out)        (the (NH, F_out, 1) scoring vectors, squeezed)
    skip_w     : (NH, F_in, F_out)  per-head skip projection
    bias       : (NH*F_out,)
    Returns (out, mask) with out: (N, NH*F_out)  -- heads concatenated on features.
    """
    NH, F_in, F_out = proj_param.shape
    N = x.shape[0]
    NHF = NH * F_out

    # --- parameter packing (pure layout glue, done once outside the kernels) ---
    w_all = jnp.transpose(proj_param, (1, 0, 2)).reshape(F_in, NHF)      # (F_in, NH*F_out)
    skip_all = jnp.transpose(skip_w, (1, 0, 2)).reshape(F_in, NHF)       # (F_in, NH*F_out)
    a_src_w = jnp.einsum('hfo,ho->fh', proj_param, a_src)                # (F_in, NH)
    a_tgt_w = jnp.einsum('hfo,ho->fh', proj_param, a_tgt)                # (F_in, NH)
    # int8 adjacency from the standard 0/-1e9 additive mask (4x fewer HBM bytes).
    # NOTE: assumes the mask is strictly {0, -1e9}; a finite per-edge additive bias
    # would be discarded.
    adj_i8 = (mask > jnp.float32(-1e8)).astype(jnp.int8)                 # (N, N) 0/1
    bias2 = bias.reshape(1, NHF)

    vmem_limit = _vmem_limit_bytes()
    tr = _pick_tile(N)   # projection row tile
    tq = _pick_tile(N)   # attention query-row tile
    tn = _pick_tile(N)   # attention neighbor tile

    # ---- stage 1: fused projection (row-tiled, megacore-parallel) ----
    proj, skip, s_src, s_tgt = pl.pallas_call(
        _gat_project_kernel,
        out_shape=(
            jax.ShapeDtypeStruct((N, NHF), jnp.bfloat16),   # aggregation values (bf16)
            jax.ShapeDtypeStruct((N, NHF), jnp.float32),    # skip projection
            jax.ShapeDtypeStruct((N, NH), jnp.float32),     # source scores
            jax.ShapeDtypeStruct((N, NH), jnp.float32),     # target scores
        ),
        grid_spec=pltpu.PrefetchScalarGridSpec(
            num_scalar_prefetch=0,
            grid=(N // tr,),
            in_specs=[
                pl.BlockSpec((tr, F_in), lambda r: (r, 0)),
                pl.BlockSpec((F_in, NHF), lambda r: (0, 0)),
                pl.BlockSpec((F_in, NHF), lambda r: (0, 0)),
                pl.BlockSpec((F_in, NH), lambda r: (0, 0)),
                pl.BlockSpec((F_in, NH), lambda r: (0, 0)),
            ],
            out_specs=[
                pl.BlockSpec((tr, NHF), lambda r: (r, 0)),
                pl.BlockSpec((tr, NHF), lambda r: (r, 0)),
                pl.BlockSpec((tr, NH), lambda r: (r, 0)),
                pl.BlockSpec((tr, NH), lambda r: (r, 0)),
            ],
        ),
        compiler_params=pltpu.CompilerParams(
            dimension_semantics=("parallel",),
            vmem_limit_bytes=vmem_limit),
    )(x, w_all, skip_all, a_src_w, a_tgt_w)

    # Hoisted once: target scores in (NH, N) layout so the attention kernel never
    # transposes inside its per-head loop (tiny XLA transpose, O(N*NH) bytes).
    s_tgt_t = jnp.transpose(s_tgt)                                        # (NH, N)

    # ---- stage 2: online-softmax attention + aggregation + epilogue ----
    # TODO(synk): NH*F_out < 128 in this config -> masked output stores; padding the
    #             head-concat width to 128 lanes would need a wrapper-side slice.
    kernel = functools.partial(_gat_attention_kernel, nh=NH, f_out=F_out)
    out = pl.pallas_call(
        kernel,
        out_shape=jax.ShapeDtypeStruct((N, NHF), x.dtype),
        grid_spec=pltpu.PrefetchScalarGridSpec(
            num_scalar_prefetch=0,
            grid=(N // tq, N // tn),          # neighbor (reduction) axis last
            in_specs=[
                pl.BlockSpec((tq, NH), lambda qi, ki: (qi, 0)),     # s_src row block
                pl.BlockSpec((NH, tn), lambda qi, ki: (0, ki)),     # s_tgt (pre-transposed)
                pl.BlockSpec((tq, tn), lambda qi, ki: (qi, ki)),    # int8 adjacency block
                pl.BlockSpec((tn, NHF), lambda qi, ki: (ki, 0)),    # neighbor values (bf16)
                pl.BlockSpec((tq, NHF), lambda qi, ki: (qi, 0)),    # skip row block
                pl.BlockSpec((1, NHF), lambda qi, ki: (0, 0)),      # bias
            ],
            out_specs=pl.BlockSpec((tq, NHF), lambda qi, ki: (qi, 0)),
            scratch_shapes=[
                pltpu.VMEM((tq, NH), jnp.float32),    # running max
                pltpu.VMEM((tq, NH), jnp.float32),    # running denominator
                pltpu.VMEM((tq, NHF), jnp.float32),   # running numerator (head-concat)
            ],
        ),
        compiler_params=pltpu.CompilerParams(
            dimension_semantics=("parallel", "arbitrary"),
            vmem_limit_bytes=vmem_limit),
    )(s_src, s_tgt_t, adj_i8, proj, skip, bias2)

    return out, mask


def _reference(x, mask, proj_param, a_src, a_tgt, skip_w, bias):
    """Pure-JAX reference mirroring the PyTorch forward (eval mode)."""
    proj = jnp.einsum('nf,hfo->hno', x, proj_param)                       # (NH, N, F_out)
    s_src = jnp.einsum('hno,ho->hn', proj, a_src)[..., None]              # (NH, N, 1)
    s_tgt = jnp.einsum('hno,ho->hn', proj, a_tgt)[..., None]              # (NH, N, 1)
    scores = s_src + jnp.transpose(s_tgt, (0, 2, 1))                      # (NH, N, N)
    scores = jnp.where(scores > 0, scores, 0.2 * scores)
    attn = jax.nn.softmax(scores + mask[None], axis=-1)
    out = jnp.einsum('hnm,hmo->hno', attn, proj)                          # (NH, N, F_out)
    skip = jnp.einsum('nf,hfo->hno', x, skip_w)
    out = out + skip
    NH, N, F_out = out.shape
    out = jnp.transpose(out, (1, 0, 2)).reshape(N, NH * F_out) + bias
    return jnp.where(out > 0, out, jnp.exp(out) - 1.0)


if __name__ == "__main__":
    N, F_IN, F_OUT, NH = 16, 32, 16, 4    # F_IN != F_OUT -> skip_proj path is exercised

    key = jax.random.PRNGKey(0)
    k_x, k_adj, k_w, k_as, k_at, k_sk = jax.random.split(key, 6)

    # node features
    x = jax.random.normal(k_x, (N, F_IN), dtype=jnp.float32)

    # connectivity mask: 0 where edge, -1e9 otherwise (self loops included)
    adj = (jax.random.uniform(k_adj, (N, N)) < 0.3) | jnp.eye(N, dtype=bool)
    mask = jnp.where(adj, 0.0, -1e9).astype(jnp.float32)

    # deterministic "xavier-style" parameter init
    def xavier(k, shape, fan_in, fan_out):
        bound = (6.0 / (fan_in + fan_out)) ** 0.5
        return jax.random.uniform(k, shape, jnp.float32, -bound, bound)

    proj_param = xavier(k_w, (NH, F_IN, F_OUT), F_IN, F_OUT)              # (NH, F_in, F_out)
    a_src = xavier(k_as, (NH, F_OUT), F_OUT, 1)                           # scoring_fn_source (squeezed)
    a_tgt = xavier(k_at, (NH, F_OUT), F_OUT, 1)                           # scoring_fn_target (squeezed)

    # skip_proj: nn.Linear(F_in, NH*F_out, bias=False) -> weight (NH*F_out, F_in)
    skip_weight = xavier(k_sk, (NH * F_OUT, F_IN), F_IN, NH * F_OUT)
    if F_OUT == F_IN:
        # PyTorch adds the raw input when dims match -> identity projection per head
        skip_w = jnp.broadcast_to(jnp.eye(F_IN, dtype=jnp.float32), (NH, F_IN, F_OUT))
    else:
        skip_w = jnp.transpose(skip_weight.reshape(NH, F_OUT, F_IN), (0, 2, 1))  # (NH, F_in, F_out)

    bias = jnp.zeros((NH * F_OUT,), dtype=jnp.float32)                    # torch zero-inits bias

    out, _ = jax.jit(gat_layer_imp1)(x, mask, proj_param, a_src, a_tgt, skip_w, bias)
    out = jax.block_until_ready(out)

    ref = _reference(x, mask, proj_param, a_src, a_tgt, skip_w, bias)

    assert out.shape == (N, NH * F_OUT), out.shape
    assert bool(jnp.all(jnp.isfinite(out)))
    # tolerance accounts for bf16 MXU operands in the aggregation + approx reciprocal
    assert bool(jnp.allclose(out, ref, rtol=2e-2, atol=2e-2)), \
        float(jnp.max(jnp.abs(out - ref)))

    print("KERNEL_OK")
</pallas_src>

<mosaic_0001>
module attributes {stable_mosaic.version = 11 : i64} {
  func.func @_gat_project_kernel(%arg0: i32, %arg1: memref<16x32xf32, #tpu.memory_space<vmem>>, %arg2: memref<32x64xf32, #tpu.memory_space<vmem>>, %arg3: memref<32x64xf32, #tpu.memory_space<vmem>>, %arg4: memref<32x4xf32, #tpu.memory_space<vmem>>, %arg5: memref<32x4xf32, #tpu.memory_space<vmem>>, %arg6: memref<16x64xbf16, #tpu.memory_space<vmem>>, %arg7: memref<16x64xf32, #tpu.memory_space<vmem>>, %arg8: memref<16x4xf32, #tpu.memory_space<vmem>>, %arg9: memref<16x4xf32, #tpu.memory_space<vmem>>) attributes {dimension_semantics = [#tpu.dimension_semantics<parallel>], iteration_bounds = array<i64: 1>, scalar_prefetch = 0 : i64, scratch_operands = 0 : i64, tpu.core_type = #tpu.core_type<tc>, window_params = [{transform_indices = @transform_0, window_bounds = array<i64: 16, 32>}, {pipeline_mode = #tpu.pipeline_mode<synchronous>, transform_indices = @transform_1, window_bounds = array<i64: 32, 64>}, {pipeline_mode = #tpu.pipeline_mode<synchronous>, transform_indices = @transform_2, window_bounds = array<i64: 32, 64>}, {pipeline_mode = #tpu.pipeline_mode<synchronous>, transform_indices = @transform_3, window_bounds = array<i64: 32, 4>}, {pipeline_mode = #tpu.pipeline_mode<synchronous>, transform_indices = @transform_4, window_bounds = array<i64: 32, 4>}, {transform_indices = @transform_5, window_bounds = array<i64: 16, 64>}, {transform_indices = @transform_6, window_bounds = array<i64: 16, 64>}, {transform_indices = @transform_7, window_bounds = array<i64: 16, 4>}, {transform_indices = @transform_8, window_bounds = array<i64: 16, 4>}]} {
    %c0 = arith.constant 0 : index
    %c0_0 = arith.constant 0 : index
    %0 = vector.load %arg1[%c0, %c0_0] : memref<16x32xf32, #tpu.memory_space<vmem>>, vector<16x32xf32>
    %c0_1 = arith.constant 0 : index
    %c0_2 = arith.constant 0 : index
    %1 = vector.load %arg2[%c0_1, %c0_2] : memref<32x64xf32, #tpu.memory_space<vmem>>, vector<32x64xf32>
    %cst = arith.constant dense<0.000000e+00> : vector<16x64xf32>
    %2 = tpu.matmul %0, %1, %cst {dimension_numbers = #tpu.dot_dimension_numbers<[1], [0], [0], [1], [0, 0, 1, 1], [], []>} : vector<16x32xf32>, vector<32x64xf32>, vector<16x64xf32> -> vector<16x64xf32>
    %3 = arith.truncf %2 : vector<16x64xf32> to vector<16x64xbf16>
    %c0_3 = arith.constant 0 : index
    %c0_4 = arith.constant 0 : index
    %4 = vector.load %arg6[%c0_3, %c0_4] : memref<16x64xbf16, #tpu.memory_space<vmem>>, vector<16x64xbf16>
    tpu.vector_store %arg6[%c0_3, %c0_4], %3 {strides = array<i32>} : memref<16x64xbf16, #tpu.memory_space<vmem>>, vector<16x64xbf16>,
    %c0_5 = arith.constant 0 : index
    %c0_6 = arith.constant 0 : index
    %5 = vector.load %arg3[%c0_5, %c0_6] : memref<32x64xf32, #tpu.memory_space<vmem>>, vector<32x64xf32>
    %cst_7 = arith.constant dense<0.000000e+00> : vector<16x64xf32>
    %6 = tpu.matmul %0, %5, %cst_7 {dimension_numbers = #tpu.dot_dimension_numbers<[1], [0], [0], [1], [0, 0, 1, 1], [], []>} : vector<16x32xf32>, vector<32x64xf32>, vector<16x64xf32> -> vector<16x64xf32>
    %c0_8 = arith.constant 0 : index
    %c0_9 = arith.constant 0 : index
    %7 = vector.load %arg7[%c0_8, %c0_9] : memref<16x64xf32, #tpu.memory_space<vmem>>, vector<16x64xf32>
    tpu.vector_store %arg7[%c0_8, %c0_9], %6 {strides = array<i32>} : memref<16x64xf32, #tpu.memory_space<vmem>>, vector<16x64xf32>,
    %c0_10 = arith.constant 0 : index
    %c0_11 = arith.constant 0 : index
    %8 = vector.load %arg4[%c0_10, %c0_11] : memref<32x4xf32, #tpu.memory_space<vmem>>, vector<32x4xf32>
    %cst_12 = arith.constant dense<0.000000e+00> : vector<16x4xf32>
    %9 = tpu.matmul %0, %8, %cst_12 {dimension_numbers = #tpu.dot_dimension_numbers<[1], [0], [0], [1], [0, 0, 1, 1], [], []>} : vector<16x32xf32>, vector<32x4xf32>, vector<16x4xf32> -> vector<16x4xf32>
    %c0_13 = arith.constant 0 : index
    %c0_14 = arith.constant 0 : index
    %10 = vector.load %arg8[%c0_13, %c0_14] : memref<16x4xf32, #tpu.memory_space<vmem>>, vector<16x4xf32>
    tpu.vector_store %arg8[%c0_13, %c0_14], %9 {strides = array<i32>} : memref<16x4xf32, #tpu.memory_space<vmem>>, vector<16x4xf32>,
    %c0_15 = arith.constant 0 : index
    %c0_16 = arith.constant 0 : index
    %11 = vector.load %arg5[%c0_15, %c0_16] : memref<32x4xf32, #tpu.memory_space<vmem>>, vector<32x4xf32>
    %cst_17 = arith.constant dense<0.000000e+00> : vector<16x4xf32>
    %12 = tpu.matmul %0, %11, %cst_17 {dimension_numbers = #tpu.dot_dimension_numbers<[1], [0], [0], [1], [0, 0, 1, 1], [], []>} : vector<16x32xf32>, vector<32x4xf32>, vector<16x4xf32> -> vector<16x4xf32>
    %c0_18 = arith.constant 0 : index
    %c0_19 = arith.constant 0 : index
    %13 = vector.load %arg9[%c0_18, %c0_19] : memref<16x4xf32, #tpu.memory_space<vmem>>, vector<16x4xf32>
    tpu.vector_store %arg9[%c0_18, %c0_19], %12 {strides = array<i32>} : memref<16x4xf32, #tpu.memory_space<vmem>>, vector<16x4xf32>,
    return
  }
  func.func @transform_0(%arg0: i32) -> (i32, i32) {
    %c0_i32 = arith.constant 0 : i32
    %c0_i32_0 = arith.constant 0 : i32
    return %arg0, %c0_i32 : i32, i32
  }
  func.func @transform_1(%arg0: i32) -> (i32, i32) {
    %c0_i32 = arith.constant 0 : i32
    %c0_i32_0 = arith.constant 0 : i32
    %c0_i32_1 = arith.constant 0 : i32
    return %c0_i32, %c0_i32_0 : i32, i32
  }
  func.func @transform_2(%arg0: i32) -> (i32, i32) {
    %c0_i32 = arith.constant 0 : i32
    %c0_i32_0 = arith.constant 0 : i32
    %c0_i32_1 = arith.constant 0 : i32
    return %c0_i32, %c0_i32_0 : i32, i32
  }
  func.func @transform_3(%arg0: i32) -> (i32, i32) {
    %c0_i32 = arith.constant 0 : i32
    %c0_i32_0 = arith.constant 0 : i32
    %c0_i32_1 = arith.constant 0 : i32
    return %c0_i32, %c0_i32_0 : i32, i32
  }
  func.func @transform_4(%arg0: i32) -> (i32, i32) {
    %c0_i32 = arith.constant 0 : i32
    %c0_i32_0 = arith.constant 0 : i32
    %c0_i32_1 = arith.constant 0 : i32
    return %c0_i32, %c0_i32_0 : i32, i32
  }
  func.func @transform_5(%arg0: i32) -> (i32, i32) {
    %c0_i32 = arith.constant 0 : i32
    %c0_i32_0 = arith.constant 0 : i32
    return %arg0, %c0_i32 : i32, i32
  }
  func.func @transform_6(%arg0: i32) -> (i32, i32) {
    %c0_i32 = arith.constant 0 : i32
    %c0_i32_0 = arith.constant 0 : i32
    return %arg0, %c0_i32 : i32, i32
  }
  func.func @transform_7(%arg0: i32) -> (i32, i32) {
    %c0_i32 = arith.constant 0 : i32
    %c0_i32_0 = arith.constant 0 : i32
    return %arg0, %c0_i32 : i32, i32
  }
  func.func @transform_8(%arg0: i32) -> (i32, i32) {
    %c0_i32 = arith.constant 0 : i32
    %c0_i32_0 = arith.constant 0 : i32
    return %arg0, %c0_i32 : i32, i32
  }
}

module attributes {stable_mosaic.version = 11 : i64} {
  func.func @_gat_attention_kernel(%arg0: i32, %arg1: i32, %arg2: memref<16x4xf32, #tpu.memory_space<vmem>>, %arg3: memref<4x16xf32, #tpu.memory_space<vmem>>, %arg4: memref<16x16xi8, #tpu.memory_space<vmem>>, %arg5: memref<16x64xbf16, #tpu.memory_space<vmem>>, %arg6: memref<16x64xf32, #tpu.memory_space<vmem>>, %arg7: memref<1x64xf32, #tpu.memory_space<vmem>>, %arg8: memref<16x64xf32, #tpu.memory_space<vmem>>, %arg9: memref<16x4xf32, #tpu.memory_space<vmem>>, %arg10: memref<16x4xf32, #tpu.memory_space<vmem>>, %arg11: memref<16x64xf32, #tpu.memory_space<vmem>>) attributes {dimension_semantics = [#tpu.dimension_semantics<parallel>, #tpu.dimension_semantics<arbitrary>], iteration_bounds = array<i64: 1, 1>, scalar_prefetch = 0 : i64, scratch_operands = 3 : i64, tpu.core_type = #tpu.core_type<tc>, window_params = [{transform_indices = @transform_0, window_bounds = array<i64: 16, 4>}, {transform_indices = @transform_1, window_bounds = array<i64: 4, 16>}, {transform_indices = @transform_2, window_bounds = array<i64: 16, 16>}, {transform_indices = @transform_3, window_bounds = array<i64: 16, 64>}, {transform_indices = @transform_4, window_bounds = array<i64: 16, 64>}, {pipeline_mode = #tpu.pipeline_mode<synchronous>, transform_indices = @transform_5, window_bounds = array<i64: 1, 64>}, {transform_indices = @transform_6, window_bounds = array<i64: 16, 64>}]} {
    %c0_i32 = arith.constant 0 : i32
    %0 = arith.cmpi eq, %arg1, %c0_i32 : i32
    %1 = arith.extui %0 : i1 to i32
    %c0_i32_0 = arith.constant 0 : i32
    %2 = arith.cmpi ne, %1, %c0_i32_0 : i32
    scf.if %2 {
      %cst_71 = arith.constant 0xFF800000 : f32
      %151 = vector.broadcast %cst_71 : f32 to vector<16x4xf32>
      %c0_72 = arith.constant 0 : index
      %c0_73 = arith.constant 0 : index
      %152 = vector.load %arg9[%c0_72, %c0_73] : memref<16x4xf32, #tpu.memory_space<vmem>>, vector<16x4xf32>
      tpu.vector_store %arg9[%c0_72, %c0_73], %151 {strides = array<i32>} : memref<16x4xf32, #tpu.memory_space<vmem>>, vector<16x4xf32>,
      %cst_74 = arith.constant 0.000000e+00 : f32
      %153 = vector.broadcast %cst_74 : f32 to vector<16x4xf32>
      %c0_75 = arith.constant 0 : index
      %c0_76 = arith.constant 0 : index
      %154 = vector.load %arg10[%c0_75, %c0_76] : memref<16x4xf32, #tpu.memory_space<vmem>>, vector<16x4xf32>
      tpu.vector_store %arg10[%c0_75, %c0_76], %153 {strides = array<i32>} : memref<16x4xf32, #tpu.memory_space<vmem>>, vector<16x4xf32>,
      %cst_77 = arith.constant 0.000000e+00 : f32
      %155 = vector.broadcast %cst_77 : f32 to vector<16x64xf32>
      %c0_78 = arith.constant 0 : index
      %c0_79 = arith.constant 0 : index
      %156 = vector.load %arg11[%c0_78, %c0_79] : memref<16x64xf32, #tpu.memory_space<vmem>>, vector<16x64xf32>
      tpu.vector_store %arg11[%c0_78, %c0_79], %155 {strides = array<i32>} : memref<16x64xf32, #tpu.memory_space<vmem>>, vector<16x64xf32>,
    } else {
    }
    %c0 = arith.constant 0 : index
    %c0_1 = arith.constant 0 : index
    %3 = vector.load %arg4[%c0, %c0_1] : memref<16x16xi8, #tpu.memory_space<vmem>>, vector<16x16xi8>
    %4 = arith.sitofp %3 : vector<16x16xi8> to vector<16x16xf32>
    %c0_2 = arith.constant 0 : index
    %c0_3 = arith.constant 0 : index
    %5 = vector.load %arg5[%c0_2, %c0_3] : memref<16x64xbf16, #tpu.memory_space<vmem>>, vector<16x64xbf16>
    %c0_4 = arith.constant 0 : index
    %c0_5 = arith.constant 0 : index
    %6 = vector.load %arg2[%c0_4, %c0_5] : memref<16x4xf32, #tpu.memory_space<vmem>>, vector<16x4xf32>
    %c0_6 = arith.constant 0 : index
    %c0_7 = arith.constant 0 : index
    %7 = vector.load %arg3[%c0_6, %c0_7] : memref<4x16xf32, #tpu.memory_space<vmem>>, vector<4x16xf32>
    %8 = vector.extract_strided_slice %6 {offsets = [0, 0], sizes = [16, 1], strides = [1, 1]} : vector<16x4xf32> to vector<16x1xf32>
    %9 = vector.extract_strided_slice %7 {offsets = [0, 0], sizes = [1, 16], strides = [1, 1]} : vector<4x16xf32> to vector<1x16xf32>
    %10 = vector.broadcast %8 : vector<16x1xf32> to vector<16x16xf32>
    %11 = vector.broadcast %9 : vector<1x16xf32> to vector<16x16xf32>
    %12 = arith.addf %10, %11 : vector<16x16xf32>
    %cst = arith.constant 0.000000e+00 : f32
    %13 = vector.broadcast %cst : f32 to vector<16x16xf32>
    %14 = arith.cmpf ogt, %12, %13 : vector<16x16xf32>
    %cst_8 = arith.constant 2.000000e-01 : f32
    %15 = vector.broadcast %cst_8 : f32 to vector<16x16xf32>
    %16 = arith.mulf %15, %12 : vector<16x16xf32>
    %17 = arith.select %14, %12, %16 : vector<16x16xi1>, vector<16x16xf32>
    %c0_9 = arith.constant 0 : index
    %c0_10 = arith.constant 0 : index
    %18 = vector.load %arg9[%c0_9, %c0_10] : memref<16x4xf32, #tpu.memory_space<vmem>>, vector<16x1xf32>
    %cst_11 = arith.constant dense<0xFF800000> : vector<16xf32>
    %19 = vector.multi_reduction <maximumf>, %17, %cst_11 [1] : vector<16x16xf32> to vector<16xf32>
    %20 = vector.shape_cast %19 : vector<16xf32> to vector<16x1xf32>
    %21 = arith.maximumf %18, %20 : vector<16x1xf32>
    %22 = arith.subf %18, %21 : vector<16x1xf32>
    %23 = math.exp %22 : vector<16x1xf32>
    %24 = vector.broadcast %21 : vector<16x1xf32> to vector<16x16xf32>
    %25 = arith.subf %17, %24 : vector<16x16xf32>
    %26 = math.exp %25 : vector<16x16xf32>
    %27 = arith.mulf %26, %4 : vector<16x16xf32>
    %c0_12 = arith.constant 0 : index
    %c0_13 = arith.constant 0 : index
    %28 = vector.load %arg10[%c0_12, %c0_13] : memref<16x4xf32, #tpu.memory_space<vmem>>, vector<16x1xf32>
    %29 = arith.mulf %23, %28 : vector<16x1xf32>
    %cst_14 = arith.constant dense<0.000000e+00> : vector<16xf32>
    %30 = vector.multi_reduction <add>, %27, %cst_14 [1] : vector<16x16xf32> to vector<16xf32>
    %31 = vector.shape_cast %30 : vector<16xf32> to vector<16x1xf32>
    %32 = arith.addf %29, %31 : vector<16x1xf32>
    %c0_15 = arith.constant 0 : index
    %c0_16 = arith.constant 0 : index
    %33 = vector.load %arg10[%c0_15, %c0_16] : memref<16x4xf32, #tpu.memory_space<vmem>>, vector<16x1xf32>
    tpu.vector_store %arg10[%c0_15, %c0_16], %32 {strides = array<i32>} : memref<16x4xf32, #tpu.memory_space<vmem>>, vector<16x1xf32>,
    %c0_17 = arith.constant 0 : index
    %c0_18 = arith.constant 0 : index
    %34 = vector.load %arg11[%c0_17, %c0_18] : memref<16x64xf32, #tpu.memory_space<vmem>>, vector<16x16xf32>
    %35 = vector.broadcast %23 : vector<16x1xf32> to vector<16x16xf32>
    %36 = arith.mulf %35, %34 : vector<16x16xf32>
    %37 = arith.truncf %27 : vector<16x16xf32> to vector<16x16xbf16>
    %38 = vector.extract_strided_slice %5 {offsets = [0, 0], sizes = [16, 16], strides = [1, 1]} : vector<16x64xbf16> to vector<16x16xbf16>
    %cst_19 = arith.constant dense<0.000000e+00> : vector<16x16xf32>
    %39 = tpu.matmul %37, %38, %cst_19 {dimension_numbers = #tpu.dot_dimension_numbers<[1], [0], [0], [1], [0, 0, 1, 1], [], []>} : vector<16x16xbf16>, vector<16x16xbf16>, vector<16x16xf32> -> vector<16x16xf32>
    %40 = arith.addf %36, %39 : vector<16x16xf32>
    %c0_20 = arith.constant 0 : index
    %c0_21 = arith.constant 0 : index
    %41 = vector.load %arg11[%c0_20, %c0_21] : memref<16x64xf32, #tpu.memory_space<vmem>>, vector<16x16xf32>
    tpu.vector_store %arg11[%c0_20, %c0_21], %40 {strides = array<i32>} : memref<16x64xf32, #tpu.memory_space<vmem>>, vector<16x16xf32>,
    %c0_22 = arith.constant 0 : index
    %c0_23 = arith.constant 0 : index
    %42 = vector.load %arg9[%c0_22, %c0_23] : memref<16x4xf32, #tpu.memory_space<vmem>>, vector<16x1xf32>
    tpu.vector_store %arg9[%c0_22, %c0_23], %21 {strides = array<i32>} : memref<16x4xf32, #tpu.memory_space<vmem>>, vector<16x1xf32>,
    %43 = vector.extract_strided_slice %6 {offsets = [0, 1], sizes = [16, 1], strides = [1, 1]} : vector<16x4xf32> to vector<16x1xf32>
    %44 = vector.extract_strided_slice %7 {offsets = [1, 0], sizes = [1, 16], strides = [1, 1]} : vector<4x16xf32> to vector<1x16xf32>
    %45 = vector.broadcast %43 : vector<16x1xf32> to vector<16x16xf32>
    %46 = vector.broadcast %44 : vector<1x16xf32> to vector<16x16xf32>
    %47 = arith.addf %45, %46 : vector<16x16xf32>
    %cst_24 = arith.constant 0.000000e+00 : f32
    %48 = vector.broadcast %cst_24 : f32 to vector<16x16xf32>
    %49 = arith.cmpf ogt, %47, %48 : vector<16x16xf32>
    %cst_25 = arith.constant 2.000000e-01 : f32
    %50 = vector.broadcast %cst_25 : f32 to vector<16x16xf32>
    %51 = arith.mulf %50, %47 : vector<16x16xf32>
    %52 = arith.select %49, %47, %51 : vector<16x16xi1>, vector<16x16xf32>
    %c0_26 = arith.constant 0 : index
    %c1 = arith.constant 1 : index
    %53 = vector.load %arg9[%c0_26, %c1] : memref<16x4xf32, #tpu.memory_space<vmem>>, vector<16x1xf32>
    %cst_27 = arith.constant dense<0xFF800000> : vector<16xf32>
    %54 = vector.multi_reduction <maximumf>, %52, %cst_27 [1] : vector<16x16xf32> to vector<16xf32>
    %55 = vector.shape_cast %54 : vector<16xf32> to vector<16x1xf32>
    %56 = arith.maximumf %53, %55 : vector<16x1xf32>
    %57 = arith.subf %53, %56 : vector<16x1xf32>
    %58 = math.exp %57 : vector<16x1xf32>
    %59 = vector.broadcast %56 : vector<16x1xf32> to vector<16x16xf32>
    %60 = arith.subf %52, %59 : vector<16x16xf32>
    %61 = math.exp %60 : vector<16x16xf32>
    %62 = arith.mulf %61, %4 : vector<16x16xf32>
    %c0_28 = arith.constant 0 : index
    %c1_29 = arith.constant 1 : index
    %63 = vector.load %arg10[%c0_28, %c1_29] : memref<16x4xf32, #tpu.memory_space<vmem>>, vector<16x1xf32>
    %64 = arith.mulf %58, %63 : vector<16x1xf32>
    %cst_30 = arith.constant dense<0.000000e+00> : vector<16xf32>
    %65 = vector.multi_reduction <add>, %62, %cst_30 [1] : vector<16x16xf32> to vector<16xf32>
    %66 = vector.shape_cast %65 : vector<16xf32> to vector<16x1xf32>
    %67 = arith.addf %64, %66 : vector<16x1xf32>
    %c0_31 = arith.constant 0 : index
    %c1_32 = arith.constant 1 : index
    %68 = vector.load %arg10[%c0_31, %c1_32] : memref<16x4xf32, #tpu.memory_space<vmem>>, vector<16x1xf32>
    tpu.vector_store %arg10[%c0_31, %c1_32], %67 {strides = array<i32>} : memref<16x4xf32, #tpu.memory_space<vmem>>, vector<16x1xf32>,
    %c0_33 = arith.constant 0 : index
    %c16 = arith.constant 16 : index
    %69 = vector.load %arg11[%c0_33, %c16] : memref<16x64xf32, #tpu.memory_space<vmem>>, vector<16x16xf32>
    %70 = vector.broadcast %58 : vector<16x1xf32> to vector<16x16xf32>
    %71 = arith.mulf %70, %69 : vector<16x16xf32>
    %72 = arith.truncf %62 : vector<16x16xf32> to vector<16x16xbf16>
    %73 = vector.extract_strided_slice %5 {offsets = [0, 16], sizes = [16, 16], strides = [1, 1]} : vector<16x64xbf16> to vector<16x16xbf16>
    %cst_34 = arith.constant dense<0.000000e+00> : vector<16x16xf32>
    %74 = tpu.matmul %72, %73, %cst_34 {dimension_numbers = #tpu.dot_dimension_numbers<[1], [0], [0], [1], [0, 0, 1, 1], [], []>} : vector<16x16xbf16>, vector<16x16xbf16>, vector<16x16xf32> -> vector<16x16xf32>
    %75 = arith.addf %71, %74 : vector<16x16xf32>
    %c0_35 = arith.constant 0 : index
    %c16_36 = arith.constant 16 : index
    %76 = vector.load %arg11[%c0_35, %c16_36] : memref<16x64xf32, #tpu.memory_space<vmem>>, vector<16x16xf32>
    tpu.vector_store %arg11[%c0_35, %c16_36], %75 {strides = array<i32>} : memref<16x64xf32, #tpu.memory_space<vmem>>, vector<16x16xf32>,
    %c0_37 = arith.constant 0 : index
    %c1_38 = arith.constant 1 : index
    %77 = vector.load %arg9[%c0_37, %c1_38] : memref<16x4xf32, #tpu.memory_space<vmem>>, vector<16x1xf32>
    tpu.vector_store %arg9[%c0_37, %c1_38], %56 {strides = array<i32>} : memref<16x4xf32, #tpu.memory_space<vmem>>, vector<16x1xf32>,
    %78 = vector.extract_strided_slice %6 {offsets = [0, 2], sizes = [16, 1], strides = [1, 1]} : vector<16x4xf32> to vector<16x1xf32>
    %79 = vector.extract_strided_slice %7 {offsets = [2, 0], sizes = [1, 16], strides = [1, 1]} : vector<4x16xf32> to vector<1x16xf32>
    %80 = vector.broadcast %78 : vector<16x1xf32> to vector<16x16xf32>
    %81 = vector.broadcast %79 : vector<1x16xf32> to vector<16x16xf32>
    %82 = arith.addf %80, %81 : vector<16x16xf32>
    %cst_39 = arith.constant 0.000000e+00 : f32
    %83 = vector.broadcast %cst_39 : f32 to vector<16x16xf32>
    %84 = arith.cmpf ogt, %82, %83 : vector<16x16xf32>
    %cst_40 = arith.constant 2.000000e-01 : f32
    %85 = vector.broadcast %cst_40 : f32 to vector<16x16xf32>
    %86 = arith.mulf %85, %82 : vector<16x16xf32>
    %87 = arith.select %84, %82, %86 : vector<16x16xi1>, vector<16x16xf32>
    %c0_41 = arith.constant 0 : index
    %c2 = arith.constant 2 : index
    %88 = vector.load %arg9[%c0_41, %c2] : memref<16x4xf32, #tpu.memory_space<vmem>>, vector<16x1xf32>
    %cst_42 = arith.constant dense<0xFF800000> : vector<16xf32>
    %89 = vector.multi_reduction <maximumf>, %87, %cst_42 [1] : vector<16x16xf32> to vector<16xf32>
    %90 = vector.shape_cast %89 : vector<16xf32> to vector<16x1xf32>
    %91 = arith.maximumf %88, %90 : vector<16x1xf32>
    %92 = arith.subf %88, %91 : vector<16x1xf32>
    %93 = math.exp %92 : vector<16x1xf32>
    %94 = vector.broadcast %91 : vector<16x1xf32> to vector<16x16xf32>
    %95 = arith.subf %87, %94 : vector<16x16xf32>
    %96 = math.exp %95 : vector<16x16xf32>
    %97 = arith.mulf %96, %4 : vector<16x16xf32>
    %c0_43 = arith.constant 0 : index
    %c2_44 = arith.constant 2 : index
    %98 = vector.load %arg10[%c0_43, %c2_44] : memref<16x4xf32, #tpu.memory_space<vmem>>, vector<16x1xf32>
    %99 = arith.mulf %93, %98 : vector<16x1xf32>
    %cst_45 = arith.constant dense<0.000000e+00> : vector<16xf32>
    %100 = vector.multi_reduction <add>, %97, %cst_45 [1] : vector<16x16xf32> to vector<16xf32>
    %101 = vector.shape_cast %100 : vector<16xf32> to vector<16x1xf32>
    %102 = arith.addf %99, %101 : vector<16x1xf32>
    %c0_46 = arith.constant 0 : index
    %c2_47 = arith.constant 2 : index
    %103 = vector.load %arg10[%c0_46, %c2_47] : memref<16x4xf32, #tpu.memory_space<vmem>>, vector<16x1xf32>
    tpu.vector_store %arg10[%c0_46, %c2_47], %102 {strides = array<i32>} : memref<16x4xf32, #tpu.memory_space<vmem>>, vector<16x1xf32>,
    %c0_48 = arith.constant 0 : index
    %c32 = arith.constant 32 : index
    %104 = vector.load %arg11[%c0_48, %c32] : memref<16x64xf32, #tpu.memory_space<vmem>>, vector<16x16xf32>
    %105 = vector.broadcast %93 : vector<16x1xf32> to vector<16x16xf32>
    %106 = arith.mulf %105, %104 : vector<16x16xf32>
    %107 = arith.truncf %97 : vector<16x16xf32> to vector<16x16xbf16>
    %108 = vector.extract_strided_slice %5 {offsets = [0, 32], sizes = [16, 16], strides = [1, 1]} : vector<16x64xbf16> to vector<16x16xbf16>
    %cst_49 = arith.constant dense<0.000000e+00> : vector<16x16xf32>
    %109 = tpu.matmul %107, %108, %cst_49 {dimension_numbers = #tpu.dot_dimension_numbers<[1], [0], [0], [1], [0, 0, 1, 1], [], []>} : vector<16x16xbf16>, vector<16x16xbf16>, vector<16x16xf32> -> vector<16x16xf32>
    %110 = arith.addf %106, %109 : vector<16x16xf32>
    %c0_50 = arith.constant 0 : index
    %c32_51 = arith.constant 32 : index
    %111 = vector.load %arg11[%c0_50, %c32_51] : memref<16x64xf32, #tpu.memory_space<vmem>>, vector<16x16xf32>
    tpu.vector_store %arg11[%c0_50, %c32_51], %110 {strides = array<i32>} : memref<16x64xf32, #tpu.memory_space<vmem>>, vector<16x16xf32>,
    %c0_52 = arith.constant 0 : index
    %c2_53 = arith.constant 2 : index
    %112 = vector.load %arg9[%c0_52, %c2_53] : memref<16x4xf32, #tpu.memory_space<vmem>>, vector<16x1xf32>
    tpu.vector_store %arg9[%c0_52, %c2_53], %91 {strides = array<i32>} : memref<16x4xf32, #tpu.memory_space<vmem>>, vector<16x1xf32>,
    %113 = vector.extract_strided_slice %6 {offsets = [0, 3], sizes = [16, 1], strides = [1, 1]} : vector<16x4xf32> to vector<16x1xf32>
    %114 = vector.extract_strided_slice %7 {offsets = [3, 0], sizes = [1, 16], strides = [1, 1]} : vector<4x16xf32> to vector<1x16xf32>
    %115 = vector.broadcast %113 : vector<16x1xf32> to vector<16x16xf32>
    %116 = vector.broadcast %114 : vector<1x16xf32> to vector<16x16xf32>
    %117 = arith.addf %115, %116 : vector<16x16xf32>
    %cst_54 = arith.constant 0.000000e+00 : f32
    %118 = vector.broadcast %cst_54 : f32 to vector<16x16xf32>
    %119 = arith.cmpf ogt, %117, %118 : vector<16x16xf32>
    %cst_55 = arith.constant 2.000000e-01 : f32
    %120 = vector.broadcast %cst_55 : f32 to vector<16x16xf32>
    %121 = arith.mulf %120, %117 : vector<16x16xf32>
    %122 = arith.select %119, %117, %121 : vector<16x16xi1>, vector<16x16xf32>
    %c0_56 = arith.constant 0 : index
    %c3 = arith.constant 3 : index
    %123 = vector.load %arg9[%c0_56, %c3] : memref<16x4xf32, #tpu.memory_space<vmem>>, vector<16x1xf32>
    %cst_57 = arith.constant dense<0xFF800000> : vector<16xf32>
    %124 = vector.multi_reduction <maximumf>, %122, %cst_57 [1] : vector<16x16xf32> to vector<16xf32>
    %125 = vector.shape_cast %124 : vector<16xf32> to vector<16x1xf32>
    %126 = arith.maximumf %123, %125 : vector<16x1xf32>
    %127 = arith.subf %123, %126 : vector<16x1xf32>
    %128 = math.exp %127 : vector<16x1xf32>
    %129 = vector.broadcast %126 : vector<16x1xf32> to vector<16x16xf32>
    %130 = arith.subf %122, %129 : vector<16x16xf32>
    %131 = math.exp %130 : vector<16x16xf32>
    %132 = arith.mulf %131, %4 : vector<16x16xf32>
    %c0_58 = arith.constant 0 : index
    %c3_59 = arith.constant 3 : index
    %133 = vector.load %arg10[%c0_58, %c3_59] : memref<16x4xf32, #tpu.memory_space<vmem>>, vector<16x1xf32>
    %134 = arith.mulf %128, %133 : vector<16x1xf32>
    %cst_60 = arith.constant dense<0.000000e+00> : vector<16xf32>
    %135 = vector.multi_reduction <add>, %132, %cst_60 [1] : vector<16x16xf32> to vector<16xf32>
    %136 = vector.shape_cast %135 : vector<16xf32> to vector<16x1xf32>
    %137 = arith.addf %134, %136 : vector<16x1xf32>
    %c0_61 = arith.constant 0 : index
    %c3_62 = arith.constant 3 : index
    %138 = vector.load %arg10[%c0_61, %c3_62] : memref<16x4xf32, #tpu.memory_space<vmem>>, vector<16x1xf32>
    tpu.vector_store %arg10[%c0_61, %c3_62], %137 {strides = array<i32>} : memref<16x4xf32, #tpu.memory_space<vmem>>, vector<16x1xf32>,
    %c0_63 = arith.constant 0 : index
    %c48 = arith.constant 48 : index
    %139 = vector.load %arg11[%c0_63, %c48] : memref<16x64xf32, #tpu.memory_space<vmem>>, vector<16x16xf32>
    %140 = vector.broadcast %128 : vector<16x1xf32> to vector<16x16xf32>
    %141 = arith.mulf %140, %139 : vector<16x16xf32>
    %142 = arith.truncf %132 : vector<16x16xf32> to vector<16x16xbf16>
    %143 = vector.extract_strided_slice %5 {offsets = [0, 48], sizes = [16, 16], strides = [1, 1]} : vector<16x64xbf16> to vector<16x16xbf16>
    %cst_64 = arith.constant dense<0.000000e+00> : vector<16x16xf32>
    %144 = tpu.matmul %142, %143, %cst_64 {dimension_numbers = #tpu.dot_dimension_numbers<[1], [0], [0], [1], [0, 0, 1, 1], [], []>} : vector<16x16xbf16>, vector<16x16xbf16>, vector<16x16xf32> -> vector<16x16xf32>
    %145 = arith.addf %141, %144 : vector<16x16xf32>
    %c0_65 = arith.constant 0 : index
    %c48_66 = arith.constant 48 : index
    %146 = vector.load %arg11[%c0_65, %c48_66] : memref<16x64xf32, #tpu.memory_space<vmem>>, vector<16x16xf32>
    tpu.vector_store %arg11[%c0_65, %c48_66], %145 {strides = array<i32>} : memref<16x64xf32, #tpu.memory_space<vmem>>, vector<16x16xf32>,
    %c0_67 = arith.constant 0 : index
    %c3_68 = arith.constant 3 : index
    %147 = vector.load %arg9[%c0_67, %c3_68] : memref<16x4xf32, #tpu.memory_space<vmem>>, vector<16x1xf32>
    tpu.vector_store %arg9[%c0_67, %c3_68], %126 {strides = array<i32>} : memref<16x4xf32, #tpu.memory_space<vmem>>, vector<16x1xf32>,
    %c0_i32_69 = arith.constant 0 : i32
    %148 = arith.cmpi eq, %arg1, %c0_i32_69 : i32
    %149 = arith.extui %148 : i1 to i32
    %c0_i32_70 = arith.constant 0 : i32
    %150 = arith.cmpi ne, %149, %c0_i32_70 : i32
    scf.if %150 {
      %c0_71 = arith.constant 0 : index
      %c0_72 = arith.constant 0 : index
      %151 = vector.load %arg10[%c0_71, %c0_72] : memref<16x4xf32, #tpu.memory_space<vmem>>, vector<16x1xf32>
      %152 = tpu.reciprocal %151 {approx = true} : vector<16x1xf32> -> vector<16x1xf32>
      %c0_73 = arith.constant 0 : index
      %c0_74 = arith.constant 0 : index
      %153 = vector.load %arg11[%c0_73, %c0_74] : memref<16x64xf32, #tpu.memory_space<vmem>>, vector<16x16xf32>
      %154 = vector.broadcast %152 : vector<16x1xf32> to vector<16x16xf32>
      %155 = arith.mulf %153, %154 : vector<16x16xf32>
      %c0_75 = arith.constant 0 : index
      %c0_76 = arith.constant 0 : index
      %156 = vector.load %arg11[%c0_75, %c0_76] : memref<16x64xf32, #tpu.memory_space<vmem>>, vector<16x16xf32>
      tpu.vector_store %arg11[%c0_75, %c0_76], %155 {strides = array<i32>} : memref<16x64xf32, #tpu.memory_space<vmem>>, vector<16x16xf32>,
      %c0_77 = arith.constant 0 : index
      %c1_78 = arith.constant 1 : index
      %157 = vector.load %arg10[%c0_77, %c1_78] : memref<16x4xf32, #tpu.memory_space<vmem>>, vector<16x1xf32>
      %158 = tpu.reciprocal %157 {approx = true} : vector<16x1xf32> -> vector<16x1xf32>
      %c0_79 = arith.constant 0 : index
      %c16_80 = arith.constant 16 : index
      %159 = vector.load %arg11[%c0_79, %c16_80] : memref<16x64xf32, #tpu.memory_space<vmem>>, vector<16x16xf32>
      %160 = vector.broadcast %158 : vector<16x1xf32> to vector<16x16xf32>
      %161 = arith.mulf %159, %160 : vector<16x16xf32>
      %c0_81 = arith.constant 0 : index
      %c16_82 = arith.constant 16 : index
      %162 = vector.load %arg11[%c0_81, %c16_82] : memref<16x64xf32, #tpu.memory_space<vmem>>, vector<16x16xf32>
      tpu.vector_store %arg11[%c0_81, %c16_82], %161 {strides = array<i32>} : memref<16x64xf32, #tpu.memory_space<vmem>>, vector<16x16xf32>,
      %c0_83 = arith.constant 0 : index
      %c2_84 = arith.constant 2 : index
      %163 = vector.load %arg10[%c0_83, %c2_84] : memref<16x4xf32, #tpu.memory_space<vmem>>, vector<16x1xf32>
      %164 = tpu.reciprocal %163 {approx = true} : vector<16x1xf32> -> vector<16x1xf32>
      %c0_85 = arith.constant 0 : index
      %c32_86 = arith.constant 32 : index
      %165 = vector.load %arg11[%c0_85, %c32_86] : memref<16x64xf32, #tpu.memory_space<vmem>>, vector<16x16xf32>
      %166 = vector.broadcast %164 : vector<16x1xf32> to vector<16x16xf32>
      %167 = arith.mulf %165, %166 : vector<16x16xf32>
      %c0_87 = arith.constant 0 : index
      %c32_88 = arith.constant 32 : index
      %168 = vector.load %arg11[%c0_87, %c32_88] : memref<16x64xf32, #tpu.memory_space<vmem>>, vector<16x16xf32>
      tpu.vector_store %arg11[%c0_87, %c32_88], %167 {strides = array<i32>} : memref<16x64xf32, #tpu.memory_space<vmem>>, vector<16x16xf32>,
      %c0_89 = arith.constant 0 : index
      %c3_90 = arith.constant 3 : index
      %169 = vector.load %arg10[%c0_89, %c3_90] : memref<16x4xf32, #tpu.memory_space<vmem>>, vector<16x1xf32>
      %170 = tpu.reciprocal %169 {approx = true} : vector<16x1xf32> -> vector<16x1xf32>
      %c0_91 = arith.constant 0 : index
      %c48_92 = arith.constant 48 : index
      %171 = vector.load %arg11[%c0_91, %c48_92] : memref<16x64xf32, #tpu.memory_space<vmem>>, vector<16x16xf32>
      %172 = vector.broadcast %170 : vector<16x1xf32> to vector<16x16xf32>
      %173 = arith.mulf %171, %172 : vector<16x16xf32>
      %c0_93 = arith.constant 0 : index
      %c48_94 = arith.constant 48 : index
      %174 = vector.load %arg11[%c0_93, %c48_94] : memref<16x64xf32, #tpu.memory_space<vmem>>, vector<16x16xf32>
      tpu.vector_store %arg11[%c0_93, %c48_94], %173 {strides = array<i32>} : memref<16x64xf32, #tpu.memory_space<vmem>>, vector<16x16xf32>,
      %c0_95 = arith.constant 0 : index
      %c0_96 = arith.constant 0 : index
      %175 = vector.load %arg11[%c0_95, %c0_96] : memref<16x64xf32, #tpu.memory_space<vmem>>, vector<16x64xf32>
      %c0_97 = arith.constant 0 : index
      %c0_98 = arith.constant 0 : index
      %176 = vector.load %arg6[%c0_97, %c0_98] : memref<16x64xf32, #tpu.memory_space<vmem>>, vector<16x64xf32>
      %177 = arith.addf %175, %176 : vector<16x64xf32>
      %c0_99 = arith.constant 0 : index
      %c0_100 = arith.constant 0 : index
      %178 = vector.load %arg7[%c0_99, %c0_100] : memref<1x64xf32, #tpu.memory_space<vmem>>, vector<1x64xf32>
      %179 = vector.broadcast %178 : vector<1x64xf32> to vector<16x64xf32>
      %180 = arith.addf %177, %179 : vector<16x64xf32>
      %cst_101 = arith.constant 0.000000e+00 : f32
      %181 = vector.broadcast %cst_101 : f32 to vector<16x64xf32>
      %182 = arith.cmpf ogt, %180, %181 : vector<16x64xf32>
      %cst_102 = arith.constant 0.000000e+00 : f32
      %183 = vector.broadcast %cst_102 : f32 to vector<16x64xf32>
      %184 = arith.minimumf %180, %183 : vector<16x64xf32>
      %185 = math.exp %184 : vector<16x64xf32>
      %cst_103 = arith.constant 1.000000e+00 : f32
      %186 = vector.broadcast %cst_103 : f32 to vector<16x64xf32>
      %187 = arith.subf %185, %186 : vector<16x64xf32>
      %188 = arith.select %182, %180, %187 : vector<16x64xi1>, vector<16x64xf32>
      %c0_104 = arith.constant 0 : index
      %c0_105 = arith.constant 0 : index
      %189 = vector.load %arg8[%c0_104, %c0_105] : memref<16x64xf32, #tpu.memory_space<vmem>>, vector<16x64xf32>
      tpu.vector_store %arg8[%c0_104, %c0_105], %188 {strides = array<i32>} : memref<16x64xf32, #tpu.memory_space<vmem>>, vector<16x64xf32>,
    } else {
    }
    return
  }
  func.func @transform_0(%arg0: i32, %arg1: i32) -> (i32, i32) {
    %c0_i32 = arith.constant 0 : i32
    %c0_i32_0 = arith.constant 0 : i32
    return %arg0, %c0_i32 : i32, i32
  }
  func.func @transform_1(%arg0: i32, %arg1: i32) -> (i32, i32) {
    %c0_i32 = arith.constant 0 : i32
    %c0_i32_0 = arith.constant 0 : i32
    return %c0_i32, %arg1 : i32, i32
  }
  func.func @transform_2(%arg0: i32, %arg1: i32) -> (i32, i32) {
    %c0_i32 = arith.constant 0 : i32
    return %arg0, %arg1 : i32, i32
  }
  func.func @transform_3(%arg0: i32, %arg1: i32) -> (i32, i32) {
    %c0_i32 = arith.constant 0 : i32
    %c0_i32_0 = arith.constant 0 : i32
    return %arg1, %c0_i32 : i32, i32
  }
  func.func @transform_4(%arg0: i32, %arg1: i32) -> (i32, i32) {
    %c0_i32 = arith.constant 0 : i32
    %c0_i32_0 = arith.constant 0 : i32
    return %arg0, %c0_i32 : i32, i32
  }
  func.func @transform_5(%arg0: i32, %arg1: i32) -> (i32, i32) {
    %c0_i32 = arith.constant 0 : i32
    %c0_i32_0 = arith.constant 0 : i32
    %c0_i32_1 = arith.constant 0 : i32
    return %c0_i32, %c0_i32_0 : i32, i32
  }
  func.func @transform_6(%arg0: i32, %arg1: i32) -> (i32, i32) {
    %c0_i32 = arith.constant 0 : i32
    %c0_i32_0 = arith.constant 0 : i32
    return %arg0, %c0_i32 : i32, i32
  }
}

</mosaic_0001>

<bundles_post_ra>
// kernel: gat_layer_imp1.2
= control target key start
LH: loop header
LB: loop body
LE: loop exit
PB: predicated region body
PF: predicated region fallthrough
CT: control target
= control target key end

     0   :  { %vm30_vm0 = vcmask 261120   ;;  %vm202_vm1 = vcmask 523264   ;;  %vm120_vm2 = vcmask 519168   ;;  %vm284_vm3 = vcmask 31744   ;;  %s627_s1 = inlined_call_operand.vmem [shape: f32[32,64], index: 1, kind: input, shape index: {}]   ;;  %s628_s2 = inlined_call_operand.vmem [shape: f32[32,64], index: 2, kind: input, shape index: {}]   ;;  %s629_s0 = inlined_call_operand.vmem [shape: f32[16,32], index: 0, kind: input, shape index: {}]   ;;  %s630_s3 = inlined_call_operand.vmem [shape: f32[32,4], index: 3, kind: input, shape index: {}]   ;;  %s631_s4 = inlined_call_operand.vmem [shape: f32[32,4], index: 4, kind: input, shape index: {}]   ;;  %s632_s6 = inlined_call_operand.vmem [shape: f32[16,64], index: 6, kind: output, shape index: {1}]   ;;  %s633_s5 = inlined_call_operand.vmem [shape: bf16[16,64], index: 5, kind: output, shape index: {0}]   ;;  %s634_s7 = inlined_call_operand.vmem [shape: f32[16,4], index: 7, kind: output, shape index: {2}]   ;;  %s635_s8 = inlined_call_operand.vmem [shape: f32[16,4], index: 8, kind: output, shape index: {3}]  }
   0x1   :  { %v26_v0 = vld [vmem:[%s627_s1] sm:$0xff]  ;;  %v27_v1 = vld [vmem:[%s627_s1 + $0x8] sm:$0xff]  ;;  %v28_v5 = vld [vmem:[%s627_s1 + $0x10] sm:$0xff] }
   0x2   :  { %v123_v2 = vld [vmem:[%s628_s2] sm:$0xff]  ;;  %v464_v3 = vpack.c.bf16 %v27_v1, %v26_v0  ;;  %v124_v4 = vld [vmem:[%s628_s2 + $0x8] sm:$0xff]  ;;  %v29_v6 = vld [vmem:[%s627_s1 + $0x18] sm:$0xff] }
   0x3   :  { %v472_v7 = vpack.c.bf16 %v124_v4, %v123_v2  ;;  %v468_v8 = vpack.c.bf16 %v29_v6, %v28_v5  ;;  %v125_v9 = vld [vmem:[%s628_s2 + $0x10] sm:$0xff]  ;;  %v126_v10 = vld [vmem:[%s628_s2 + $0x18] sm:$0xff]  ;;  %v24_v11 = vld [vmem:[%s629_s0] sm:$0xff] }
   0x4   :  { %465 = vmatprep.subr.bf16.mxu0 %v464_v3  ;;  %v476_v12 = vpack.c.bf16 %v126_v10, %v125_v9  ;;  %428 = vmatprep.mubr.msk.f32.mxu0 %vm30_vm0, %v24_v11  ;;  %v205_v13 = vld [vmem:[%s630_s3] sm:$0xff]  ;;  %v206_v14 = vld [vmem:[%s630_s3 + $0x8] sm:$0xff]  ;;  %v207_v19 = vld [vmem:[%s630_s3 + $0x10] sm:$0xff] }
   0x5   :  { %473 = vmatprep.subr.bf16.mxu1 %v472_v7  ;;  %467 = vmatpush3.bf16.msra.mxu0 %v464_v3  ;;  %v287_v15 = vld [vmem:[%s631_s4] sm:$0xff]  ;;  %v288_v16 = vld [vmem:[%s631_s4 + $0x8] sm:$0xff]  ;;  %v480_v17 = vpack.c.bf16 %v206_v14, %v205_v13  ;;  %v208_v20 = vld [vmem:[%s630_s3 + $0x18] sm:$0xff] }
   0x6   :  { %475 = vmatpush3.bf16.msra.mxu1 %v472_v7  ;;  %469 = vmatprep.subr.bf16.mxu0 %v468_v8  ;;  %v488_v18 = vpack.c.bf16 %v288_v16, %v287_v15  ;;  %v289_v21 = vld [vmem:[%s631_s4 + $0x10] sm:$0xff]  ;;  %v290_v22 = vld [vmem:[%s631_s4 + $0x18] sm:$0xff]  ;;  %v25_v23 = vld [vmem:[%s629_s0 + $0x8] sm:$0xff]  ;;  %v484_v24 = vpack.c.bf16 %v208_v20, %v207_v19 }
   0x7   :  { %477 = vmatprep.subr.bf16.mxu1 %v476_v12  ;;  %439 = vmatprep.mubr.msk.f32.mxu1 %vm30_vm0, %v24_v11  ;;  %v492_v25 = vpack.c.bf16 %v290_v22, %v289_v21 }
   0x9   :  { %471 = vmatpush3.bf16.msra.mxu0 %v468_v8 }
   0xa   :  { %479 = vmatpush3.bf16.msra.mxu1 %v476_v12  ;;  %481 = vmatprep.subr.bf16.mxu0 %v480_v17 }
   0xb   :  { %489 = vmatprep.subr.bf16.mxu1 %v488_v18 }
   0xc   :  { %429 = vmatmul.mubr.msk.f32.vlgmr.msra.gmra.mrb[0].mxu0 %vm30_vm0, %v25_v23 }
   0xd   :  { %440 = vmatmul.mubr.msk.f32.vlgmr.msra.gmra.mrb[0].mxu1 %vm30_vm0, %v25_v23  ;;  %483 = vmatpush3.bf16.msra.mxu0 %v480_v17 }
   0xe   :  { %491 = vmatpush3.bf16.msra.mxu1 %v488_v18  ;;  %485 = vmatprep.subr.bf16.mxu0 %v484_v24 }
   0xf   :  { %493 = vmatprep.subr.bf16.mxu1 %v492_v25  ;;  %450 = vmatprep.mubr.msk.f32.mxu0 %vm30_vm0, %v24_v11 }
  0x10   :  { %461 = vmatprep.mubr.msk.f32.mxu1 %vm30_vm0, %v24_v11 }
  0x11   :  { %487 = vmatpush3.bf16.msra.mxu0 %v484_v24 }
  0x12   :  { %495 = vmatpush3.bf16.msra.mxu1 %v492_v25 }
  0x14   :  { %451 = vmatmul.mubr.msk.f32.vlgmr.msra.gmra.mrb[2].mxu0 %vm30_vm0, %v25_v23 }
  0x15   :  { %462 = vmatmul.mubr.msk.f32.vlgmr.msra.gmra.mrb[2].mxu1 %vm30_vm0, %v25_v23 }
  0xdf   :  { %v430_v26 = vpop.f32.mrb[0].mxu0 }
  0xe0   :  { %v395_v27 = vpack.c.bf16 %v430_v26, %v430_v26  ;;  %v441_v28 = vpop.f32.mrb[0].mxu1  ;;  %v103_v29 = vpop.f32.mrb[1].mxu0 }
  0xe1   :  { %204 = vst.msk [vmem:[%s632_s6 + $0x8] sm:$0xff] %vm202_vm1, %v441_v28  ;;  %v394_v30 = vpack.c.bf16 %v103_v29, %v103_v29  ;;  %v193_v31 = vpop.f32.mrb[1].mxu1 }
  0xe2   :  { %122 = vst.msk [vmem:[%s633_s5 + $0x4] sm:$0xf] %vm120_vm2, %v395_v27 }
  0xe3   :  { %203 = vst.msk [vmem:[%s632_s6] sm:$0xff] %vm202_vm1, %v193_v31 }
  0xe4   :  { %121 = vst.msk [vmem:[%s633_s5] sm:$0xf] %vm120_vm2, %v394_v30 }
  0xe7   :  { %v452_v32 = vpop.f32.mrb[2].mxu0 }
  0xe8   :  { %286 = vst.msk [vmem:[%s634_s7 + $0x8] sm:$0xff] %vm284_vm3, %v452_v32  ;;  %v463_v33 = vpop.f32.mrb[2].mxu1  ;;  %v275_v34 = vpop.f32.mrb[3].mxu0 }
  0xe9   :  { %367 = vst.msk [vmem:[%s635_s8 + $0x8] sm:$0xff] %vm284_vm3, %v463_v33  ;;  %285 = vst.msk [vmem:[%s634_s7] sm:$0xff] %vm284_vm3, %v275_v34  ;;  %v357_v35 = vpop.f32.mrb[3].mxu1 }
  0xea   :  { %366 = vst.msk [vmem:[%s635_s8] sm:$0xff] %vm284_vm3, %v357_v35 }

// kernel: gat_layer_imp1.3
= control target key start
LH: loop header
LB: loop body
LE: loop exit
PB: predicated region body
PF: predicated region fallthrough
CT: control target
= control target key end

     0   :  { %v909_v1 = vmov 0   ;;  %v910_v2 = vmov 1   ;;  %s1236_s0 = inlined_call_operand.vmem [shape: f32[16,4], index: 0, kind: input, shape index: {}]   ;;  %s1237_s1 = inlined_call_operand.vmem [shape: f32[4,16], index: 1, kind: input, shape index: {}]   ;;  %s1238_s2 = inlined_call_operand.vmem [shape: s8[16,16], index: 2, kind: input, shape index: {}]   ;;  %s1239_s3 = inlined_call_operand.vmem [shape: bf16[16,64], index: 3, kind: input, shape index: {}]   ;;  %s1240_s4 = inlined_call_operand.vmem [shape: f32[16,64], index: 4, kind: input, shape index: {}]   ;;  %s1241_s5 = inlined_call_operand.vmem [shape: f32[1,64], index: 5, kind: input, shape index: {}]   ;;  %s1242_s6 = inlined_call_operand.hbm [shape: f32[16,64], index: 6, kind: output, shape index: {}]  }
   0x1   :  { %v45_v0 = vld [vmem:[%s1236_s0] sm:$0xff]  ;;  %818 = vset.pattern.permute.xlu0 %v909_v1  ;;  %819 = vset.pattern.permute.xlu1 %v910_v2 }
   0x2   :  { %50 = vperm.xlu0 %818, %v45_v0   ;;  %192 = vperm.xlu1 %819, %v45_v0  }
   0x3   :  { %11 = vsyncpa [#allocation6], 0  ;;  %v46_v3 = vld [vmem:[%s1236_s0 + $0x8] sm:$0xff]  ;;  %v911_v4 = vmov 2   ;;  %v912_v5 = vmov 3   ;;  %v58_v6 = vlaneseq  ;;  %vm72_vm0 = vcmask 130048  }
   0x4   :  { %v47_v10 = vld [vmem:[%s1237_s1] sm:$0xf]  ;;  %vm29_vm7 = vcmask 31744   ;;  %v913_v47 = vmov -inf   ;;  %v914_v58 = vmov 0.0   ;;  %vm117_vm10 = vcmask 7168  }
   0x5   :  { %v59_v7 = vshrl.u32 %v58_v6, 7  ;;  %30 = vst.msk [vmem:[#allocation2] sm:$0xff] %vm29_vm7, %v913_v47  ;;  %31 = vst.msk [vmem:[#allocation2 + $0x8] sm:$0xff] %vm29_vm7, %v913_v47  ;;  %784 = vmatprep.subr.bf16.mxu1 %v914_v58  ;;  %778 = vmatprep.subr.bf16.mxu0 %v914_v58  ;;  %v1020_v59 = vld [vmem:[%s1239_s3] sm:$0xff]   ;;  %vm257_vm11 = vcmask 15368   ;;  %vm403_vm12 = vcmask 23568  }
   0x6   :  { %55 = vperm.xlu0 %818, %v46_v3   ;;  %196 = vperm.xlu1 %819, %v46_v3   ;;  %32 = vst.msk [vmem:[#allocation3] sm:$0xff] %vm29_vm7, %v914_v58  ;;  %33 = vst.msk [vmem:[#allocation3 + $0x8] sm:$0xff] %vm29_vm7, %v914_v58  ;;  %s915_s3 = smov 80   ;;  %vm549_vm13 = vcmask 31768   ;;  %s916_s27 = smov 112   ;;  %vm917_vm14 = vmmov 0  }
   0x7   :  { %v60_v8 = vsub.s32 0, %v59_v7  ;;  %v201_v9 = vsub.s32 1, %v59_v7  ;;  %v347_v17 = vsub.s32 2, %v59_v7  ;;  %v493_v28 = vsub.s32 3, %v59_v7  ;;  %779 = vmatpush3.bf16.msra.mxu0 %v1020_v59  ;;  %786 = vmatprep.mubr.msk.bf16.mxu1 %vm917_vm14, %v914_v58  ;;  %s918_s28 = smov 96   ;;  %s920_s7 = smov 32  }
   0x8   :  { %790 = vmatprep.subr.bf16.mxu0 %v914_v58  ;;  %780 = vmatprep.mubr.msk.bf16.mxu0 %vm917_vm14, %v914_v58  ;;  %vm34_vm15 = vcmask 523264   ;;  %s921_s8 = smov 48   ;;  %s922_s15 = smov [#allocation5]  }
   0x9   :  { %v61_v11 = vrot.slane %v47_v10, %v60_v8  ;;  %v202_v12 = vrot.slane %v47_v10, %v201_v9  ;;  %v348_v27 = vrot.slane %v47_v10, %v347_v17  ;;  %v494_v40 = vrot.slane %v47_v10, %v493_v28  ;;  %36 = vst.msk [vmem:[#allocation4 + $0x8] sm:$0xff] %vm34_vm15, %v914_v58  ;;  %s747_s16 = sshll.u32 %s922_s15, 4  ;;  %s748_s16 = int_to_ptr.vmem [resolvable:$true] %s747_s16 }
   0xa   :  { %820 = vset.pattern.permute.xlu0 %v911_v4  ;;  %821 = vset.pattern.permute.xlu1 %v911_v4  ;;  %35 = vst.msk [vmem:[#allocation4] sm:$0xff] %vm34_vm15, %v914_v58  ;;  %p890_p1 = scmp.lt.s32.totalorder %s748_s16, %s748_s16 }
   0xb   :  { %338 = vperm.xlu0 %820, %v45_v0   ;;  %342 = vperm.xlu1 %821, %v46_v3  }
   0xc   :  { %v1024_v60 = vld [vmem:[#allocation2] sm:$0xff]  ;;  %v1029_v63 = vld [vmem:[#allocation2 + $0x8] sm:$0xff] }
   0xf   :  { %822 = vset.pattern.permute.xlu1 %v912_v5  ;;  %823 = vset.pattern.permute.xlu0 %v912_v5 }
  0x10   :  { %484 = vperm.xlu1 %822, %v45_v0   ;;  %488 = vperm.xlu0 %823, %v46_v3  }
  0x14   :  { %824 = vset.pattern.permute.xlu1 %v910_v2  ;;  %825 = vset.pattern.permute.xlu0 %v910_v2 }
  0x81   :  { %v51_v13 = vpop.permute.xlu0 %50  ;;  %v193_v14 = vpop.permute.xlu1 %192 }
  0x82   :  { %v62_v15 = vadd.f32 %v61_v11, %v51_v13  ;;  %v203_v16 = vadd.f32 %v202_v12, %v193_v14 }
  0x84   :  { %v66_v18 = vmul.f32 0.2, %v62_v15  ;;  %v207_v19 = vmul.f32 0.2, %v203_v16  ;;  %vm64_vm1 = vcmp.gt.f32.partialorder %v62_v15, 0.0  ;;  %vm205_vm2 = vcmp.gt.f32.partialorder %v203_v16, 0.0 }
  0x85   :  { %v56_v20 = vpop.permute.xlu0 %55  ;;  %v197_v21 = vpop.permute.xlu1 %196 }
  0x86   :  { %v63_v22 = vadd.f32 %v61_v11, %v56_v20  ;;  %v977_v23 = vsel %vm64_vm1, %v62_v15, %v66_v18  ;;  %v204_v24 = vadd.f32 %v202_v12, %v197_v21  ;;  %v979_v25 = vsel %vm205_vm2, %v203_v16, %v207_v19 }
  0x87   :  { %v73_v26 = vsel %vm72_vm0, %v977_v23, -inf  ;;  %v213_v31 = vsel %vm72_vm0, %v979_v25, -inf  ;;  %vm332_vm1 = vcmask 261248   ;;  %vm478_vm2 = vcmask 392448  }
  0x88   :  { %v67_v29 = vmul.f32 0.2, %v63_v22  ;;  %74 = vmax.xlane.f32.xlu1 %v73_v26  ;;  %v208_v30 = vmul.f32 0.2, %v204_v24  ;;  %vm65_vm3 = vcmp.gt.f32.partialorder %v63_v22, 0.0  ;;  %vm206_vm4 = vcmp.gt.f32.partialorder %v204_v24, 0.0 }
  0x8a   :  { %v985_v32 = vsel %vm65_vm3, %v63_v22, %v67_v29  ;;  %v987_v33 = vsel %vm206_vm4, %v204_v24, %v208_v30  ;;  %v339_v34 = vpop.permute.xlu0 %338  ;;  %v343_v35 = vpop.permute.xlu1 %342  ;;  %vm624_vm3 = vcmask 523648  }
  0x8b   :  { %v76_v36 = vsel %vm72_vm0, %v985_v32, -inf  ;;  %v349_v37 = vadd.f32 %v348_v27, %v339_v34  ;;  %v350_v38 = vadd.f32 %v348_v27, %v343_v35  ;;  %v216_v39 = vsel %vm72_vm0, %v987_v33, -inf }
  0x8c   :  { %77 = vmax.xlane.f32.xlu0 %v76_v36  ;;  %214 = vmax.xlane.f32.xlu1 %v213_v31 }
  0x8d   :  { %v353_v41 = vmul.f32 0.2, %v349_v37  ;;  %v354_v42 = vmul.f32 0.2, %v350_v38  ;;  %vm351_vm5 = vcmp.gt.f32.partialorder %v349_v37, 0.0  ;;  %vm352_vm6 = vcmp.gt.f32.partialorder %v350_v38, 0.0 }
  0x8f   :  { %v993_v43 = vsel %vm351_vm5, %v349_v37, %v353_v41  ;;  %v485_v44 = vpop.permute.xlu1 %484  ;;  %v995_v45 = vsel %vm352_vm6, %v350_v38, %v354_v42  ;;  %v489_v46 = vpop.permute.xlu0 %488 }
  0x90   :  { %217 = vmax.xlane.f32.xlu0 %v216_v39  ;;  %v359_v48 = vsel %vm72_vm0, %v993_v43, -inf  ;;  %v495_v49 = vadd.f32 %v494_v40, %v485_v44  ;;  %v496_v50 = vadd.f32 %v494_v40, %v489_v46  ;;  %v362_v51 = vsel %vm72_vm0, %v995_v45, -inf }
  0x91   :  { %360 = vmax.xlane.f32.xlu1 %v359_v48 }
  0x92   :  { %v499_v52 = vmul.f32 0.2, %v495_v49  ;;  %v500_v53 = vmul.f32 0.2, %v496_v50  ;;  %vm497_vm8 = vcmp.gt.f32.partialorder %v495_v49, 0.0  ;;  %vm498_vm9 = vcmp.gt.f32.partialorder %v496_v50, 0.0 }
  0x94   :  { %363 = vmax.xlane.f32.xlu0 %v362_v51  ;;  %v1003_v54 = vsel %vm497_vm8, %v495_v49, %v499_v52  ;;  %v1005_v55 = vsel %vm498_vm9, %v496_v50, %v500_v53  ;;  %v767_v49 = vld [vmem:[%s1238_s2] sm:$0xf]   ;;  %s919_s2 = smov 16  }
  0x95   :  { %v505_v56 = vsel %vm72_vm0, %v1003_v54, -inf  ;;  %v508_v57 = vsel %vm72_vm0, %v1005_v55, -inf  ;;  %v769_v50 = vunpack.c.1.s8 %v767_v49 }
  0x96   :  { %506 = vmax.xlane.f32.xlu1 %v505_v56 }
  0x98   :  { %509 = vmax.xlane.f32.xlu0 %v508_v57 }
 0x115   :  { %v75_v61 = vpop.xlane.xlu1 %74 }
 0x116   :  { %v1027_v62 = vmax.f32 %v1024_v60, %v75_v61 }
 0x118   :  { %v81_v0 = vsub.f32 %v1024_v60, %v1027_v62  ;;  %189 = vst.msk [vmem:[#allocation2] sm:$0xff] %vm117_vm10, %v1027_v62 }
 0x119   :  { %v78_v3 = vpop.xlane.xlu0 %77  ;;  %v215_v8 = vpop.xlane.xlu1 %214 }
 0x11a   :  { %v1036_v6 = vmax.f32 %v1029_v63, %v78_v3 }
 0x11c   :  { %v82_v7 = vsub.f32 %v1029_v63, %v1036_v6  ;;  %190 = vst.msk [vmem:[#allocation2 + $0x8] sm:$0xff] %vm117_vm10, %v1036_v6 }
 0x11d   :  { %v218_v12 = vpop.xlane.xlu0 %217 }
 0x11e   :  { %v361_v16 = vpop.xlane.xlu1 %360 }
 0x11f   :  { %v1042_v9 = vld [vmem:[#allocation2] sm:$0xff] }
 0x120   :  { %v1045_v10 = vmax.f32 %v1042_v9, %v215_v8 }
 0x121   :  { %v364_v19 = vpop.xlane.xlu0 %363 }
 0x122   :  { %v221_v11 = vsub.f32 %v1042_v9, %v1045_v10  ;;  %335 = vst.msk [vmem:[#allocation2] sm:$0xff] %vm257_vm11, %v1045_v10  ;;  %229 = vperm.xlu1 %824, %v1045_v10  }
 0x123   :  { %v1052_v13 = vld [vmem:[#allocation2 + $0x8] sm:$0xff]  ;;  %v507_v26 = vpop.xlane.xlu1 %506 }
 0x124   :  { %v1055_v14 = vmax.f32 %v1052_v13, %v218_v12 }
 0x125   :  { %v510_v29 = vpop.xlane.xlu0 %509 }
 0x126   :  { %v222_v15 = vsub.f32 %v1052_v13, %v1055_v14  ;;  %336 = vst.msk [vmem:[#allocation2 + $0x8] sm:$0xff] %vm257_vm11, %v1055_v14  ;;  %234 = vperm.xlu0 %825, %v1055_v14   ;;  %826 = vset.pattern.permute.xlu1 %v909_v1  ;;  %v105_v14 = vld [vmem:[#allocation3] sm:$0xff] }
 0x127   :  { %89 = vperm.xlu1 %826, %v1027_v62   ;;  %v223_v62 = vmul.f32 1.442695, %v221_v11 }
 0x128   :  { %v225_v9 = vmul.f32 1.442695, %v222_v15 }
 0x129   :  { %v1064_v17 = vld [vmem:[#allocation2] sm:$0xff] }
 0x12a   :  { %v1067_v18 = vmax.f32 %v1064_v17, %v361_v16  ;;  %567 = vrot.lane.b32.xlu0 %v1020_v59, %s915_s3 }
 0x12b   :  { %94 = vperm.xlu1 %826, %v1036_v6   ;;  %829 = vset.pattern.permute.xlu0 %v909_v1 }
 0x12c   :  { %v367_v20 = vsub.f32 %v1064_v17, %v1067_v18  ;;  %481 = vst.msk [vmem:[#allocation2] sm:$0xff] %vm403_vm12, %v1067_v18 }
 0x12d   :  { %v1076_v21 = vld [vmem:[#allocation2 + $0x8] sm:$0xff] }
 0x12e   :  { %v1079_v22 = vmax.f32 %v1076_v21, %v364_v19 }
 0x12f   :  { %827 = vset.pattern.permute.xlu1 %v911_v4 }
 0x130   :  { %v368_v24 = vsub.f32 %v1076_v21, %v1079_v22  ;;  %482 = vst.msk [vmem:[#allocation2 + $0x8] sm:$0xff] %vm403_vm12, %v1079_v22  ;;  %375 = vperm.xlu1 %827, %v1067_v18  }
 0x132   :  { %v371_v10 = vmul.f32 1.442695, %v368_v24 }
 0x133   :  { %v1087_v27 = vld [vmem:[#allocation2] sm:$0xff] }
 0x134   :  { %v1090_v28 = vmax.f32 %v1087_v27, %v507_v26  ;;  %380 = vperm.xlu1 %827, %v1079_v22   ;;  %v106_v22 = vld [vmem:[#allocation3 + $0x8] sm:$0xff] }
 0x136   :  { %v513_v30 = vsub.f32 %v1087_v27, %v1090_v28  ;;  %627 = vst.msk [vmem:[#allocation2] sm:$0xff] %vm549_vm13, %v1090_v28 }
 0x137   :  { %v1097_v31 = vld [vmem:[#allocation2 + $0x8] sm:$0xff] }
 0x138   :  { %v1100_v34 = vmax.f32 %v1097_v31, %v510_v29  ;;  %275 = vrot.lane.b32.xlu1 %v1020_v59, %s916_s27  ;;  %v515_v11 = vmul.f32 1.442695, %v513_v30 }
 0x139   :  { %828 = vset.pattern.permute.xlu1 %v912_v5 }
 0x13a   :  { %v514_v35 = vsub.f32 %v1097_v31, %v1100_v34  ;;  %628 = vst.msk [vmem:[#allocation2 + $0x8] sm:$0xff] %vm549_vm13, %v1100_v34 }
 0x13c   :  { %521 = vperm.xlu1 %828, %v1090_v28  }
 0x140   :  { %526 = vperm.xlu1 %828, %v1100_v34  }
 0x144   :  { %421 = vrot.lane.b32.xlu1 %v1020_v59, %s918_s28 }
 0x145   :  { %830 = vset.pattern.permute.xlu1 %v909_v1 }
 0x1a1   :  { %v230_v36 = vpop.permute.xlu1 %229 }
 0x1a2   :  { %v237_v37 = vsub.f32 %v979_v25, %v230_v36 }
 0x1a4   :  { %v239_v38 = vmul.f32 1.442695, %v237_v37 }
 0x1a5   :  { %v235_v39 = vpop.permute.xlu0 %234 }
 0x1a6   :  { %v238_v40 = vsub.f32 %v987_v33, %v235_v39  ;;  %v90_v41 = vpop.permute.xlu1 %89  ;;  %845 = vpow2.f32 %v239_v38  ;;  %v768_v33 = vunpack.c.0.s8 %v767_v49 }
 0x1a7   :  { %v97_v42 = vsub.f32 %v977_v23, %v90_v41  ;;  %v42_v23 = vcvt.s32.f32 %v769_v50 }
 0x1a8   :  { %v241_v44 = vmul.f32 1.442695, %v238_v40  ;;  %v41_v59 = vcvt.s32.f32 %v768_v33 }
 0x1a9   :  { %v99_v46 = vmul.f32 1.442695, %v97_v42  ;;  %v568_v37 = vpop.permute.xlu0 %567 }
 0x1aa   :  { %847 = vpow2.f32 %v241_v44  ;;  %v95_v47 = vpop.permute.xlu1 %94 }
 0x1ab   :  { %849 = vpow2.f32 %v99_v46  ;;  %v98_v48 = vsub.f32 %v985_v32, %v95_v47 }
 0x1ad   :  { %v101_v25 = vmul.f32 1.442695, %v98_v48 }
 0x1af   :  { %851 = vpow2.f32 %v101_v25  ;;  %v376_v51 = vpop.permute.xlu1 %375  ;;  %v83_v25 = vmul.f32 1.442695, %v81_v0 }
 0x1b0   :  { %v383_v52 = vsub.f32 %v993_v43, %v376_v51  ;;  %v846_v56 = vpop.eup %845 }
 0x1b1   :  { %v243_v26 = vmul.f32 %v846_v56, %v41_v59 }
 0x1b2   :  { %v385_v53 = vmul.f32 1.442695, %v383_v52 }
 0x1b3   :  { %v381_v57 = vpop.permute.xlu1 %380  ;;  %v249_v60 = vsel %vm72_vm0, %v243_v26, 0.0 }
 0x1b4   :  { %v848_v61 = vpop.eup %847  ;;  %v384_v3 = vsub.f32 %v995_v45, %v381_v57  ;;  %853 = vpow2.f32 %v385_v53  ;;  %v85_v45 = vmul.f32 1.442695, %v82_v7 }
 0x1b5   :  { %v850_v32 = vpop.eup %849  ;;  %v244_v8 = vmul.f32 %v848_v61, %v42_v23 }
 0x1b6   :  { %v387_v12 = vmul.f32 1.442695, %v384_v3  ;;  %v103_v16 = vmul.f32 %v850_v32, %v41_v59 }
 0x1b7   :  { %v276_v19 = vpop.permute.xlu1 %275  ;;  %v274_v36 = vpack.c.bf16 %v244_v8, %v243_v26  ;;  %v252_v0 = vsel %vm72_vm0, %v244_v8, 0.0 }
 0x1b8   :  { %855 = vpow2.f32 %v387_v12  ;;  %785 = vmatpush3.bf16.msra.mxu1 %v276_v19  ;;  %v109_v29 = vsel %vm72_vm0, %v103_v16, 0.0 }
 0x1b9   :  { %v852_v43 = vpop.eup %851  ;;  %110 = vadd.xlane.f32.xlu1 %v109_v29  ;;  %796 = vmatprep.subr.bf16.mxu1 %v914_v58  ;;  %857 = vpow2.f32 %v85_v45 }
 0x1ba   :  { %v104_v38 = vmul.f32 %v852_v43, %v42_v23 }
 0x1bb   :  { %787 = vmatmul.mubr.msk.bf16.vlgmr.msra.gmra.mrb[0].mxu1 %vm72_vm0, %v274_v36  ;;  %v522_v39 = vpop.permute.xlu1 %521 }
 0x1bc   :  { %v529_v40 = vsub.f32 %v1003_v54, %v522_v39  ;;  %v112_v41 = vsel %vm72_vm0, %v104_v38, 0.0  ;;  %v134_v42 = vpack.c.bf16 %v104_v38, %v103_v16  ;;  %797 = vmatpush3.bf16.msra.mxu1 %v568_v37  ;;  %798 = vmatprep.mubr.msk.bf16.mxu1 %vm917_vm14, %v914_v58  ;;  %v517_v39 = vmul.f32 1.442695, %v514_v35 }
 0x1bd   :  { %113 = vadd.xlane.f32.xlu0 %v112_v41 }
 0x1be   :  { %v531_v44 = vmul.f32 1.442695, %v529_v40  ;;  %781 = vmatmul.mubr.msk.bf16.vlgmr.msra.gmra.mrb[0].mxu0 %vm72_vm0, %v134_v42  ;;  %v854_v63 = vpop.eup %853  ;;  %v369_v40 = vmul.f32 1.442695, %v367_v20 }
 0x1bf   :  { %v527_v46 = vpop.permute.xlu1 %526  ;;  %792 = vmatprep.mubr.msk.bf16.mxu0 %vm917_vm14, %v914_v58  ;;  %v389_v48 = vmul.f32 %v854_v63, %v41_v59  ;;  %v120_v63 = vld [vmem:[#allocation4] sm:$0xff] }
 0x1c0   :  { %v530_v6 = vsub.f32 %v1005_v55, %v527_v46  ;;  %859 = vpow2.f32 %v531_v44 }
 0x1c1   :  { %v395_v13 = vsel %vm72_vm0, %v389_v48, 0.0 }
 0x1c2   :  { %v856_v54 = vpop.eup %855  ;;  %v533_v7 = vmul.f32 1.442695, %v530_v6 }
 0x1c3   :  { %v422_v47 = vpop.permute.xlu1 %421  ;;  %v390_v49 = vmul.f32 %v856_v54, %v42_v23  ;;  %v858_v50 = vpop.eup %857  ;;  %v121_v54 = vld [vmem:[#allocation4 + $0x8] sm:$0xff] }
 0x1c4   :  { %861 = vpow2.f32 %v533_v7  ;;  %791 = vmatpush3.bf16.msra.mxu0 %v422_v47  ;;  %v108_v27 = vmul.f32 %v858_v50, %v106_v22 }
 0x1c5   :  { %v420_v55 = vpack.c.bf16 %v390_v49, %v389_v48  ;;  %863 = vpow2.f32 %v83_v25 }
 0x1c6   :  { %865 = vpow2.f32 %v223_v62 }
 0x1c7   :  { %793 = vmatmul.mubr.msk.bf16.vlgmr.msra.gmra.mrb[4].mxu0 %vm72_vm0, %v420_v55  ;;  %867 = vpow2.f32 %v225_v9 }
 0x1c8   :  { %869 = vpow2.f32 %v371_v10 }
 0x1c9   :  { %871 = vpow2.f32 %v515_v11 }
 0x1ca   :  { %129 = vperm.xlu1 %830, %v858_v50   ;;  %v860_v51 = vpop.eup %859  ;;  %873 = vpow2.f32 %v517_v39 }
 0x1cb   :  { %v535_v52 = vmul.f32 %v860_v51, %v41_v59  ;;  %875 = vpow2.f32 %v369_v40 }
 0x1cd   :  { %v541_v57 = vsel %vm72_vm0, %v535_v52, 0.0 }
 0x1ce   :  { %v862_v33 = vpop.eup %861  ;;  %831 = vset.pattern.permute.xlu1 %v910_v2 }
 0x1cf   :  { %v536_v53 = vmul.f32 %v862_v33, %v42_v23  ;;  %v864_v58 = vpop.eup %863  ;;  %v398_v23 = vsel %vm72_vm0, %v390_v49, 0.0 }
 0x1d0   :  { %v866_v61 = vpop.eup %865  ;;  %v107_v15 = vmul.f32 %v864_v58, %v105_v14 }
 0x1d1   :  { %v566_v56 = vpack.c.bf16 %v536_v53, %v535_v52  ;;  %v544_v59 = vsel %vm72_vm0, %v536_v53, 0.0  ;;  %v868_v3 = vpop.eup %867 }
 0x1d2   :  { %v870_v32 = vpop.eup %869 }
 0x1d3   :  { %799 = vmatmul.mubr.msk.bf16.vlgmr.msra.gmra.mrb[4].mxu1 %vm72_vm0, %v566_v56  ;;  %124 = vperm.xlu0 %829, %v864_v58   ;;  %v1169_v8 = vpop.eup %871 }
 0x1d4   :  { %v874_v50 = vpop.eup %873 }
 0x1d5   :  { %v876_v33 = vpop.eup %875 }
 0x1d7   :  { %832 = vset.pattern.permute.xlu0 %v910_v2 }
 0x1ee   :  { %250 = vadd.xlane.f32.xlu1 %v249_v60 }
 0x1f2   :  { %253 = vadd.xlane.f32.xlu0 %v252_v0 }
 0x1f6   :  { %399 = vadd.xlane.f32.xlu0 %v398_v23 }
 0x1fa   :  { %542 = vadd.xlane.f32.xlu0 %v541_v57 }
 0x1fe   :  { %545 = vadd.xlane.f32.xlu0 %v544_v59 }
 0x1ff   :  { %264 = vperm.xlu1 %831, %v866_v61  }
 0x203   :  { %833 = vset.pattern.permute.xlu1 %v911_v4 }
 0x214   :  { %269 = vperm.xlu0 %832, %v868_v3  }
 0x218   :  { %834 = vset.pattern.permute.xlu0 %v911_v4 }
 0x219   :  { %415 = vperm.xlu0 %834, %v870_v32  }
 0x21d   :  { %835 = vset.pattern.permute.xlu0 %v912_v5 }
 0x21e   :  { %556 = vperm.xlu0 %835, %v1169_v8  }
 0x222   :  { %838 = vset.pattern.permute.xlu0 %v909_v1 }
 0x223   :  { %396 = vadd.xlane.f32.xlu1 %v395_v13 }
 0x246   :  { %v111_v21 = vpop.xlane.xlu1 %110 }
 0x247   :  { %v115_v24 = vadd.f32 %v111_v21, %v107_v15 }
 0x249   :  { %118 = vst.msk [vmem:[#allocation3] sm:$0xff] %vm117_vm10, %v115_v24 }
 0x24a   :  { %v114_v28 = vpop.xlane.xlu0 %113  ;;  %v130_v12 = vpop.permute.xlu1 %129 }
 0x24b   :  { %v116_v30 = vadd.f32 %v114_v28, %v108_v27  ;;  %v133_v18 = vmul.f32 %v130_v12, %v121_v54 }
 0x24d   :  { %119 = vst.msk [vmem:[#allocation3 + $0x8] sm:$0xff] %vm117_vm10, %v116_v30 }
 0x250   :  { %v245_v16 = vld [vmem:[#allocation3] sm:$0xff] }
 0x251   :  { %v247_v19 = vmul.f32 %v866_v61, %v245_v16 }
 0x252   :  { %v125_v26 = vpop.permute.xlu0 %124 }
 0x253   :  { %v132_v31 = vmul.f32 %v125_v26, %v120_v63 }
 0x254   :  { %v246_v43 = vld [vmem:[#allocation3 + $0x8] sm:$0xff] }
 0x255   :  { %v248_v37 = vmul.f32 %v868_v3, %v246_v43 }
 0x27b   :  { %v251_v29 = vpop.xlane.xlu1 %250 }
 0x27c   :  { %v255_v36 = vadd.f32 %v251_v29, %v247_v19 }
 0x27e   :  { %258 = vst.msk [vmem:[#allocation3] sm:$0xff] %vm257_vm11, %v255_v36 }
 0x27f   :  { %v254_v38 = vpop.xlane.xlu0 %253  ;;  %v265_v11 = vpop.permute.xlu1 %264 }
 0x280   :  { %v256_v45 = vadd.f32 %v254_v38, %v248_v37 }
 0x282   :  { %259 = vst.msk [vmem:[#allocation3 + $0x8] sm:$0xff] %vm257_vm11, %v256_v45 }
 0x283   :  { %v400_v44 = vpop.xlane.xlu0 %399 }
 0x285   :  { %v391_v3 = vld [vmem:[#allocation3] sm:$0xff] }
 0x287   :  { %v543_v34 = vpop.xlane.xlu0 %542 }
 0x289   :  { %v392_v41 = vld [vmem:[#allocation3 + $0x8] sm:$0xff] }
 0x28a   :  { %v394_v42 = vmul.f32 %v870_v32, %v392_v41  ;;  %v393_v32 = vmul.f32 %v876_v33, %v391_v3 }
 0x28b   :  { %v546_v53 = vpop.xlane.xlu0 %545 }
 0x28c   :  { %v402_v46 = vadd.f32 %v400_v44, %v394_v42 }
 0x28e   :  { %405 = vst.msk [vmem:[#allocation3 + $0x8] sm:$0xff] %vm403_vm12, %v402_v46  ;;  %v315_v6 = vpop.f32.mrb[0].mxu1 }
 0x28f   :  { %v788_v7 = vpop.f32.mrb[1].mxu1  ;;  %324 = vrot.lane.b32.xlu1 %v315_v6, %s919_s2 }
 0x290   :  { %v318_v35 = vpop.f32.mrb[2].mxu1 }
 0x291   :  { %v178_v47 = vpop.f32.mrb[0].mxu0  ;;  %v789_v17 = vpop.f32.mrb[3].mxu1 }
 0x292   :  { %v185_v20 = vadd.f32 %v178_v47, %v132_v31  ;;  %v782_v48 = vpop.f32.mrb[1].mxu0 }
 0x293   :  { %v181_v49 = vpop.f32.mrb[2].mxu0  ;;  %326 = vrot.lane.b32.xlu1 %v318_v35, %s919_s2  ;;  %v270_v16 = vpop.permute.xlu0 %269 }
 0x294   :  { %187 = vst.msk [vmem:[#allocation4] sm:$0xff] %vm72_vm0, %v185_v20  ;;  %v186_v25 = vadd.f32 %v181_v49, %v133_v18  ;;  %v783_v55 = vpop.f32.mrb[3].mxu0 }
 0x295   :  { %v538_v51 = vld [vmem:[#allocation3 + $0x8] sm:$0xff] }
 0x296   :  { %v540_v52 = vmul.f32 %v874_v50, %v538_v51  ;;  %188 = vst.msk [vmem:[#allocation4 + $0x8] sm:$0xff] %vm72_vm0, %v186_v25 }
 0x297   :  { %410 = vperm.xlu1 %833, %v876_v33  }
 0x298   :  { %v548_v56 = vadd.f32 %v546_v53, %v540_v52  ;;  %v416_v38 = vpop.permute.xlu0 %415 }
 0x29a   :  { %551 = vst.msk [vmem:[#allocation3 + $0x8] sm:$0xff] %vm549_vm13, %v548_v56  ;;  %v461_v58 = vpop.f32.mrb[4].mxu0 }
 0x29b   :  { %v794_v60 = vpop.f32.mrb[5].mxu0  ;;  %470 = vrot.lane.b32.xlu1 %v461_v58, %s920_s7 }
 0x29c   :  { %v464_v62 = vpop.f32.mrb[6].mxu0  ;;  %836 = vset.pattern.permute.xlu1 %v912_v5 }
 0x29d   :  { %v795_v0 = vpop.f32.mrb[7].mxu0  ;;  %v261_v28 = vld [vmem:[#allocation4 + $0x8] sm:$0xff]  ;;  %v557_v42 = vpop.permute.xlu0 %556 }
 0x29e   :  { %v273_v19 = vmul.f32 %v270_v16, %v261_v28 }
 0x29f   :  { %472 = vrot.lane.b32.xlu1 %v464_v62, %s920_s7 }
 0x2a1   :  { %v633_v23 = vld [vmem:[#allocation3 + $0x8] sm:$0xff] }
 0x2a2   :  { %877 = vrcp.f32 %v633_v23 }
 0x2a3   :  { %561 = vperm.xlu1 %836, %v874_v50  }
 0x2a6   :  { %v607_v57 = vpop.f32.mrb[4].mxu1 }
 0x2a7   :  { %v800_v59 = vpop.f32.mrb[5].mxu1  ;;  %616 = vrot.lane.b32.xlu1 %v607_v57, %s921_s8 }
 0x2a8   :  { %v610_v61 = vpop.f32.mrb[6].mxu1  ;;  %837 = vset.pattern.permute.xlu1 %v909_v1 }
 0x2a9   :  { %v801_v9 = vpop.f32.mrb[7].mxu1  ;;  %618 = vrot.lane.b32.xlu0 %v610_v61, %s921_s8 }
 0x2ac   :  { %v878_v10 = vpop.eup %877 }
 0x2ad   :  { %645 = vperm.xlu0 %838, %v878_v10  }
 0x2b0   :  { %v397_v13 = vpop.xlane.xlu1 %396 }
 0x2b1   :  { %v401_v14 = vadd.f32 %v397_v13, %v393_v32  ;;  %840 = vset.pattern.permute.xlu0 %v911_v4  ;;  %v763_v32 = vld [vmem:[%s1241_s5] ss:$0 sm:$0xff] }
 0x2b3   :  { %404 = vst.msk [vmem:[#allocation3] sm:$0xff] %vm403_vm12, %v401_v14 }
 0x2ba   :  { %v537_v15 = vld [vmem:[#allocation3] sm:$0xff] }
 0x2bb   :  { %v539_v21 = vmul.f32 %v1169_v8, %v537_v15  ;;  %v260_v8 = vld [vmem:[#allocation4] sm:$0xff] }
 0x2bc   :  { %v272_v27 = vmul.f32 %v265_v11, %v260_v8  ;;  %v714_v11 = vld [vmem:[%s1240_s4] sm:$0xff] }
 0x2bd   :  { %v547_v22 = vadd.f32 %v543_v34, %v539_v21 }
 0x2bf   :  { %550 = vst.msk [vmem:[#allocation3] sm:$0xff] %vm549_vm13, %v547_v22 }
 0x2c6   :  { %v672_v1 = vld [vmem:[#allocation3] sm:$0xff] }
 0x2c7   :  { %879 = vrcp.f32 %v672_v1 }
 0x2d1   :  { %v880_v24 = vpop.eup %879 }
 0x2d2   :  { %680 = vperm.xlu0 %840, %v880_v24   ;;  %640 = vperm.xlu1 %837, %v880_v24  }
 0x2d6   :  { %843 = vset.pattern.permute.xlu0 %v912_v5  ;;  %839 = vset.pattern.permute.xlu1 %v910_v2 }
 0x2d7   :  { %705 = vperm.xlu0 %843, %v878_v10   ;;  %660 = vperm.xlu1 %839, %v880_v24  }
 0x2db   :  { %665 = vperm.xlu1 %839, %v878_v10  }
 0x2df   :  { %841 = vset.pattern.permute.xlu1 %v911_v4 }
 0x2e0   :  { %685 = vperm.xlu1 %841, %v878_v10   ;;  %v715_v10 = vld [vmem:[%s1240_s4 + $0x8] sm:$0xff]  ;;  %s885_s4 = scalar_lea.vmem %s748_s16, 256 }
 0x2e1   :  { %p886_p0 = scmp.ne.s32.totalorder %s748_s16, %s885_s4  ;;  %p891_p2 = scmp.lt.s32.totalorder %s885_s4, %s885_s4 }
 0x2e3   :  { %p892_p3 = por %p891_p2, %p890_p1 }
 0x2e4   :  { %842 = vset.pattern.permute.xlu1 %v912_v5 }
 0x2e5   :  { %700 = vperm.xlu1 %842, %v880_v24   ;;  %p893_p4 = pnand %p892_p3, %p886_p0 }
 0x301   :  { %v325_v30 = vpop.permute.xlu1 %324 }
 0x302   :  { %v330_v12 = vadd.f32 %v325_v30, %v272_v27 }
 0x304   :  { %333 = vst.msk [vmem:[#allocation4] sm:$0xff] %vm332_vm1, %v330_v12 }
 0x305   :  { %v327_v2 = vpop.permute.xlu1 %326 }
 0x306   :  { %v331_v26 = vadd.f32 %v327_v2, %v273_v19 }
 0x308   :  { %334 = vst.msk [vmem:[#allocation4 + $0x8] sm:$0xff] %vm332_vm1, %v331_v26 }
 0x30b   :  { %v406_v4 = vld [vmem:[#allocation4] sm:$0xff] }
 0x30f   :  { %v407_v36 = vld [vmem:[#allocation4 + $0x8] sm:$0xff] }
 0x310   :  { %v419_v45 = vmul.f32 %v416_v38, %v407_v36 }
 0x316   :  { %v411_v29 = vpop.permute.xlu1 %410 }
 0x317   :  { %v418_v43 = vmul.f32 %v411_v29, %v406_v4 }
 0x31a   :  { %v471_v5 = vpop.permute.xlu1 %470 }
 0x31b   :  { %v476_v37 = vadd.f32 %v471_v5, %v418_v43  ;;  %v619_v31 = vpop.permute.xlu0 %618 }
 0x31d   :  { %479 = vst.msk [vmem:[#allocation4] sm:$0xff] %vm478_vm2, %v476_v37 }
 0x31e   :  { %v473_v39 = vpop.permute.xlu1 %472 }
 0x31f   :  { %v477_v40 = vadd.f32 %v473_v39, %v419_v45 }
 0x321   :  { %480 = vst.msk [vmem:[#allocation4 + $0x8] sm:$0xff] %vm478_vm2, %v477_v40 }
 0x322   :  { %v562_v41 = vpop.permute.xlu1 %561 }
 0x324   :  { %v552_v44 = vld [vmem:[#allocation4] sm:$0xff] }
 0x325   :  { %v564_v46 = vmul.f32 %v557_v42, %v552_v44 }
 0x326   :  { %v617_v63 = vpop.permute.xlu1 %616 }
 0x327   :  { %v622_v6 = vadd.f32 %v617_v63, %v564_v46 }
 0x328   :  { %v553_v54 = vld [vmem:[#allocation4 + $0x8] sm:$0xff] }
 0x329   :  { %v565_v7 = vmul.f32 %v562_v41, %v553_v54  ;;  %625 = vst.msk [vmem:[#allocation4] sm:$0xff] %vm624_vm3, %v622_v6 }
 0x32b   :  { %v623_v34 = vadd.f32 %v619_v31, %v565_v7 }
 0x32c   :  { %v646_v47 = vpop.permute.xlu0 %645 }
 0x32d   :  { %626 = vst.msk [vmem:[#allocation4 + $0x8] sm:$0xff] %vm624_vm3, %v623_v34 }
 0x330   :  { %v636_v18 = vld [vmem:[#allocation4] sm:$0xff] }
 0x334   :  { %v637_v35 = vld [vmem:[#allocation4 + $0x8] sm:$0xff] }
 0x335   :  { %v649_v17 = vmul.f32 %v646_v47, %v637_v35 }
 0x337   :  { %651 = vst.msk [vmem:[#allocation4 + $0x8] sm:$0xff] %vm72_vm0, %v649_v17 }
 0x33e   :  { %v657_v25 = vld [vmem:[#allocation4 + $0x8] sm:$0xff] }
 0x351   :  { %v641_v20 = vpop.permute.xlu1 %640  ;;  %v681_v56 = vpop.permute.xlu0 %680 }
 0x352   :  { %v648_v48 = vmul.f32 %v641_v20, %v636_v18 }
 0x354   :  { %650 = vst.msk [vmem:[#allocation4] sm:$0xff] %vm72_vm0, %v648_v48 }
 0x356   :  { %v661_v49 = vpop.permute.xlu1 %660  ;;  %v706_v0 = vpop.permute.xlu0 %705 }
 0x35a   :  { %v666_v55 = vpop.permute.xlu1 %665 }
 0x35b   :  { %v656_v50 = vld [vmem:[#allocation4] sm:$0xff]  ;;  %v669_v51 = vmul.f32 %v666_v55, %v657_v25 }
 0x35c   :  { %v668_v33 = vmul.f32 %v661_v49, %v656_v50 }
 0x35d   :  { %671 = vst.msk [vmem:[#allocation4 + $0x8] sm:$0xff] %vm332_vm1, %v669_v51 }
 0x35e   :  { %670 = vst.msk [vmem:[#allocation4] sm:$0xff] %vm332_vm1, %v668_v33 }
 0x35f   :  { %v686_v53 = vpop.permute.xlu1 %685 }
 0x364   :  { %v677_v52 = vld [vmem:[#allocation4 + $0x8] sm:$0xff]  ;;  %v701_v61 = vpop.permute.xlu1 %700 }
 0x365   :  { %v689_v58 = vmul.f32 %v686_v53, %v677_v52  ;;  %v676_v60 = vld [vmem:[#allocation4] sm:$0xff] }
 0x366   :  { %v688_v62 = vmul.f32 %v681_v56, %v676_v60 }
 0x367   :  { %691 = vst.msk [vmem:[#allocation4 + $0x8] sm:$0xff] %vm478_vm2, %v689_v58 }
 0x368   :  { %690 = vst.msk [vmem:[#allocation4] sm:$0xff] %vm478_vm2, %v688_v62 }
 0x36e   :  { %v697_v23 = vld [vmem:[#allocation4 + $0x8] sm:$0xff] }
 0x36f   :  { %v709_v57 = vmul.f32 %v706_v0, %v697_v23  ;;  %v696_v59 = vld [vmem:[#allocation4] sm:$0xff] }
 0x370   :  { %v708_v9 = vmul.f32 %v701_v61, %v696_v59 }
 0x371   :  { %711 = vst.msk [vmem:[#allocation4 + $0x8] sm:$0xff] %vm624_vm3, %v709_v57 }
 0x372   :  { %710 = vst.msk [vmem:[#allocation4] sm:$0xff] %vm624_vm3, %v708_v9 }
 0x378   :  { %v713_v3 = vld [vmem:[#allocation4 + $0x8] sm:$0xff] }
 0x379   :  { %v712_v13 = vld [vmem:[#allocation4] sm:$0xff]  ;;  %v717_v14 = vadd.f32 %v715_v10, %v713_v3 }
 0x37a   :  { %v716_v15 = vadd.f32 %v714_v11, %v712_v13 }
 0x37b   :  { %v726_v21 = vadd.f32 %v763_v32, %v717_v14 }
 0x37c   :  { %v725_v22 = vadd.f32 %v763_v32, %v716_v15 }
 0x37d   :  { %v730_v1 = vmin.f32 %v726_v21, 0.0  ;;  %vm728_vm0 = vcmp.gt.f32.partialorder %v726_v21, 0.0 }
 0x37e   :  { %v729_v24 = vmin.f32 %v725_v22, 0.0  ;;  %vm727_vm4 = vcmp.gt.f32.partialorder %v725_v22, 0.0 }
 0x37f   :  { %v733_v8 = vmul.f32 1.442695, %v730_v1 }
 0x380   :  { %v731_v27 = vmul.f32 1.442695, %v729_v24 }
 0x381   :  { %881 = vpow2.f32 %v733_v8 }
 0x382   :  { %883 = vpow2.f32 %v731_v27 }
 0x38b   :  { %v882_v28 = vpop.eup %881 }
 0x38c   :  { %v884_v30 = vpop.eup %883  ;;  %v765_v12 = vadd.f32 -1.0, %v882_v28 }
 0x38d   :  { %v764_v16 = vadd.f32 -1.0, %v884_v30 }
 0x38e   :  { %v738_v19 = vsel %vm728_vm0, %v726_v21, %v765_v12 }
 0x38f   :  { %v737_v2 = vsel %vm727_vm4, %v725_v22, %v764_v16  ;;  %741 = vst.msk [vmem:[#allocation5 + $0x8] sm:$0xff] %vm34_vm15, %v738_v19 }
 0x390   :  { %740 = vst.msk [vmem:[#allocation5] sm:$0xff] %vm34_vm15, %v737_v2 }
 0x391   :  { %896 = shalt.err (!%p893_p4)
}
 0x392   :  { %s897_s18 = scalar_lea.hbm %s1242_s6, 256 }
 0x393   :  { %p898_p5 = scmp.ne.s32.totalorder %s1242_s6, %s897_s18  ;;  %p901_p6 = scmp.lt.u32.totalorder %s897_s18, %s1242_s6 }
 0x395   :  { %p903_p7 = pnand %p901_p6, %p898_p5 }
 0x397   :  { %906 = shalt.err (!%p903_p7)
}
 0x398   :  { %s923_s23 = smov 128   ;;  %s924_s24 = smov 8  }
 0x399   :  { %753 = dma.vmem_to_hbm [thread:$0]  %s748_s16, 256, %s1242_s6, [#allocation6], %s923_s23, %s923_s23, %s924_s24  }
 0x39a   :  { %907 = dma.done.wait [#allocation6], 256  }
 0x39b   :  { %908 = vsyncadd [#allocation6], 4294967040 }
 0x39c   :  { %757 = vsyncpa [#allocation6], 1 }

</bundles_post_ra>
